<compile_context>
chip_gen: v7x
topology: tpu7x:2x2x1
jax: 0.10.0
libtpu: 0.0.40
codegen_flags: <defaults>
</compile_context>

<pallas_src>
import functools

import jax
import jax.numpy as jnp
from jax.experimental import pallas as pl
from jax.experimental.pallas import tpu as pltpu

EPS = 1e-5

# Lanes per grid step.  Sized for v5e's 16 MiB default scoped VMEM (~5-6 MiB
# live per step at H=32 incl. double buffers); v6e/v7x can go 2x larger.
DEFAULT_TILE_N = 4096


def _round_up(a, b):
    return (a + b - 1) // b * b


# --------------------------------------------------------------------------
# In-kernel helpers
# --------------------------------------------------------------------------
def _masks(i, tile_n, seq_len, n_real, d):
    """Per-lane masks for grid step i: forward tap valid, backward tap valid,
    output position is real (not end-of-array padding)."""
    lane = jax.lax.broadcasted_iota(jnp.int32, (1, tile_n), 1)
    gpos = lane + i * tile_n
    pos = gpos % seq_len
    return pos >= d, pos < (seq_len - d), gpos < n_real


def _taps(a, lh, rh, d, oos, mask_fwd, mask_bwd, lane128):
    """Build the +/- d dilated conv taps of `a` (C, tn) using 128-lane halos.

    tap_plus[t]  = (a[t-d] + oos)  (0 where t-d crosses a sequence boundary)
    tap_minus[t] = (a[t+d] + oos)  (0 where t+d crosses a sequence boundary)
    The BN scale is folded into the conv weights, so zeroing (v + off/scale)
    at out-of-range taps reproduces torch's zero padding of the BN output.
    """
    tn = a.shape[-1]
    # +d tap: lanes >= d come from this tile, lanes < d from the left halo.
    cur_p = pltpu.roll(a, shift=d, axis=1)
    halo_p = pltpu.roll(lh, shift=d, axis=1)
    head = jnp.where(lane128 < d, halo_p, cur_p[:, :128])
    sp = head if tn == 128 else jnp.concatenate([head, cur_p[:, 128:]], axis=1)
    sp = jnp.where(mask_fwd, sp + oos, 0.0)
    # -d tap: lanes < tn-d come from this tile, last d lanes from the right halo.
    cur_m = pltpu.roll(a, shift=tn - d, axis=1)
    halo_m = pltpu.roll(rh, shift=128 - d, axis=1)
    tail = jnp.where(lane128 >= 128 - d, halo_m, cur_m[:, tn - 128:])
    sm = tail if tn == 128 else jnp.concatenate([cur_m[:, :tn - 128], tail], axis=1)
    sm = jnp.where(mask_bwd, sm + oos, 0.0)
    return sp, sm


def _channel_stats(h, tn):
    """Per-channel (sum, sum^2) over lanes, reduced on the MXU (ones-column dot)."""
    ones = jnp.ones((tn, 1), jnp.float32)
    s = jnp.dot(h, ones, preferred_element_type=jnp.float32)
    s2 = jnp.dot(h * h, ones, preferred_element_type=jnp.float32)
    return jnp.concatenate([s, s2], axis=1)[None]  # (1, C, 2)


# --------------------------------------------------------------------------
# Layer kernels
# --------------------------------------------------------------------------
def _layer1_kernel(pp_ref, xc_ref, xl_ref, xr_ref, act_ref, st_ref, *,
                   seq_len, n_real):
    """BN(1) -> Conv1d(1->H, k=3, d=1) -> ReLU, plus output stats."""
    i = pl.program_id(0)
    tn = xc_ref.shape[-1]
    lane128 = jax.lax.broadcasted_iota(jnp.int32, (1, 128), 1)
    mask_f, mask_b, valid = _masks(i, tn, seq_len, n_real, 1)

    pp = pp_ref[...]                 # (H, 8) packed params
    w1e = pp[:, 0:3]                 # (H, 3) conv weight * BN1 scale
    b1 = pp[:, 3:4]                  # (H, 1)
    oos = pp[0:1, 4:5]               # (1, 1) BN1 offset / scale

    x = xc_ref[...]                  # (1, tn)
    sp, sm = _taps(x, xl_ref[...], xr_ref[...], 1, oos, mask_f, mask_b, lane128)
    u = x + oos
    # Cin == 1, K == 3: three broadcast multiply-adds on the VPU.
    h = w1e[:, 0:1] * sp + w1e[:, 1:2] * u + w1e[:, 2:3] * sm + b1
    h = jnp.where(valid, jnp.maximum(h, 0.0), 0.0)   # zero padded tail -> stats stay exact
    act_ref[...] = h
    st_ref[...] = _channel_stats(h, tn)


def _mid_kernel(pp_ref, w_ref, ac_ref, al_ref, ar_ref, act_ref, st_ref, *,
                dilation, seq_len, n_real):
    """BN(H) -> Conv1d(H->H, k=3, dilation=d) -> ReLU, plus output stats."""
    i = pl.program_id(0)
    tn = ac_ref.shape[-1]
    lane128 = jax.lax.broadcasted_iota(jnp.int32, (1, 128), 1)
    mask_f, mask_b, valid = _masks(i, tn, seq_len, n_real, dilation)

    pp = pp_ref[...]                 # (H, 2)
    oos = pp[:, 0:1]                 # (H, 1) BN offset / scale (per input channel)
    bias = pp[:, 1:2]                # (H, 1) conv bias

    a = ac_ref[...]                  # (H, tn)
    sp, sm = _taps(a, al_ref[...], ar_ref[...], dilation, oos, mask_f, mask_b, lane128)
    # Three accumulated K=H dots: no (3H, tn) taps concat is ever materialized.
    acc = jnp.dot(w_ref[0], sp, preferred_element_type=jnp.float32)
    acc = acc + jnp.dot(w_ref[1], a + oos, preferred_element_type=jnp.float32)
    acc = acc + jnp.dot(w_ref[2], sm, preferred_element_type=jnp.float32)
    h = jnp.where(valid, jnp.maximum(acc + bias, 0.0), 0.0)
    act_ref[...] = h
    st_ref[...] = _channel_stats(h, tn)


def _final_kernel(pp_ref, w_ref, ac_ref, al_ref, ar_ref, o_ref, *,
                  dilation, seq_len, n_real):
    """BN(H) -> Conv1d(H->1, k=3, dilation=8) -> Sigmoid."""
    i = pl.program_id(0)
    tn = ac_ref.shape[-1]
    lane128 = jax.lax.broadcasted_iota(jnp.int32, (1, 128), 1)
    mask_f, mask_b, _ = _masks(i, tn, seq_len, n_real, dilation)

    pp = pp_ref[...]                 # (H, 2)
    oos = pp[:, 0:1]                 # (H, 1)
    b4 = pp[0:1, 1:2]                # (1, 1)

    a = ac_ref[...]
    sp, sm = _taps(a, al_ref[...], ar_ref[...], dilation, oos, mask_f, mask_b, lane128)
    y = jnp.dot(w_ref[0], sp, preferred_element_type=jnp.float32)
    y = y + jnp.dot(w_ref[1], a + oos, preferred_element_type=jnp.float32)
    y = y + jnp.dot(w_ref[2], sm, preferred_element_type=jnp.float32)
    y = y + b4
    # sigmoid(y) == 0.5 * tanh(0.5*y) + 0.5 : EUP transcendental, no VPU divide.
    o_ref[...] = 0.5 * jnp.tanh(0.5 * y) + 0.5


# --------------------------------------------------------------------------
# Forward wrapper (one jit; the tiny stats finalize / weight folding between
# pallas_calls is plain JAX and fuses into glue ops)
# --------------------------------------------------------------------------
@functools.partial(jax.jit, static_argnums=(2,))
def tcn2_forward(X, params, hidden_size):
    """X: (B, L) float32 -> (B, L) float32."""
    B, L = X.shape
    H = hidden_size
    N = B * L
    (g1, be1, w1, b1, g2, be2, w2, b2,
     g3, be3, w3, b3, g4, be4, w4, b4) = params

    tile_n = min(DEFAULT_TILE_N, _round_up(N, 128))
    n_pad = _round_up(N, tile_n)
    num_tiles = n_pad // tile_n
    blocks_per_tile = tile_n // 128
    num_128_blocks = n_pad // 128

    x = jnp.pad(X.reshape(1, N), ((0, 0), (0, n_pad - N)))

    # ---- BN1 (single channel): global two-pass stats computed in-wrapper ----
    mean1 = jnp.mean(X)
    var1 = jnp.mean((X - mean1) ** 2)
    scale1 = g1[0] * jax.lax.rsqrt(var1 + EPS)
    off1 = be1[0] - mean1 * scale1
    oos1 = off1 / jnp.where(scale1 == 0, 1.0, scale1)

    pp1 = jnp.zeros((H, 8), jnp.float32)
    pp1 = pp1.at[:, 0:3].set(w1[:, 0, :] * scale1)   # BN1 scale folded into conv1
    pp1 = pp1.at[:, 3].set(b1)
    pp1 = pp1.at[0, 4].set(oos1)

    # ---- BlockSpecs ----
    def lane_spec(c):
        return pl.BlockSpec((c, tile_n), lambda i: (0, i))

    def left_halo_spec(c):
        return pl.BlockSpec(
            (c, 128), lambda i: (0, jnp.maximum(i * blocks_per_tile - 1, 0)))

    def right_halo_spec(c):
        return pl.BlockSpec(
            (c, 128),
            lambda i: (0, jnp.minimum((i + 1) * blocks_per_tile, num_128_blocks - 1)))

    def const_spec2(shape):
        return pl.BlockSpec(shape, lambda i: (0, 0))

    def const_spec3(shape):
        return pl.BlockSpec(shape, lambda i: (0, 0, 0))

    st_spec = pl.BlockSpec((1, H, 2), lambda i: (i, 0, 0))
    act_shape = jax.ShapeDtypeStruct((H, n_pad), jnp.float32)
    st_shape = jax.ShapeDtypeStruct((num_tiles, H, 2), jnp.float32)
    cp = pltpu.CompilerParams(dimension_semantics=("parallel",))

    # ---- layer 1 ----
    act1, st1 = pl.pallas_call(
        functools.partial(_layer1_kernel, seq_len=L, n_real=N),
        grid=(num_tiles,),
        in_specs=[const_spec2((H, 8)), lane_spec(1), left_halo_spec(1), right_halo_spec(1)],
        out_specs=[lane_spec(H), st_spec],
        out_shape=(act_shape, st_shape),
        compiler_params=cp,
    )(pp1, x, x, x)

    def bn_fold(stats, g, be, w):
        """Global BN stats from per-tile partials; fold scale into conv weights."""
        s = jnp.sum(stats, axis=0)                          # (H, 2)
        mean = s[:, 0] / N
        var = jnp.maximum(s[:, 1] / N - mean * mean, 0.0)
        scale = g * jax.lax.rsqrt(var + EPS)
        off = be - mean * scale
        oos = off / jnp.where(scale == 0, 1.0, scale)
        w_eff = jnp.transpose(w * scale[None, :, None], (2, 0, 1))  # (3, Cout, Cin)
        return oos, w_eff

    # ---- layer 2 (d=2) ----
    oos2, w2e = bn_fold(st1, g2, be2, w2)
    pp2 = jnp.stack([oos2, b2], axis=1)                     # (H, 2)
    act2, st2 = pl.pallas_call(
        functools.partial(_mid_kernel, dilation=2, seq_len=L, n_real=N),
        grid=(num_tiles,),
        in_specs=[const_spec2((H, 2)), const_spec3((3, H, H)),
                  lane_spec(H), left_halo_spec(H), right_halo_spec(H)],
        out_specs=[lane_spec(H), st_spec],
        out_shape=(act_shape, st_shape),
        compiler_params=cp,
    )(pp2, w2e, act1, act1, act1)

    # ---- layer 3 (d=4) ----
    oos3, w3e = bn_fold(st2, g3, be3, w3)
    pp3 = jnp.stack([oos3, b3], axis=1)
    act3, st3 = pl.pallas_call(
        functools.partial(_mid_kernel, dilation=4, seq_len=L, n_real=N),
        grid=(num_tiles,),
        in_specs=[const_spec2((H, 2)), const_spec3((3, H, H)),
                  lane_spec(H), left_halo_spec(H), right_halo_spec(H)],
        out_specs=[lane_spec(H), st_spec],
        out_shape=(act_shape, st_shape),
        compiler_params=cp,
    )(pp3, w3e, act2, act2, act2)

    # ---- layer 4 (d=8) + sigmoid ----
    oos4, w4e = bn_fold(st3, g4, be4, w4)                   # w4e: (3, 1, H)
    pp4 = jnp.zeros((H, 2), jnp.float32).at[:, 0].set(oos4).at[0, 1].set(b4[0])
    out_pad = pl.pallas_call(
        functools.partial(_final_kernel, dilation=8, seq_len=L, n_real=N),
        grid=(num_tiles,),
        in_specs=[const_spec2((H, 2)), const_spec3((3, 1, H)),
                  lane_spec(H), left_halo_spec(H), right_halo_spec(H)],
        out_specs=lane_spec(1),
        out_shape=jax.ShapeDtypeStruct((1, n_pad), jnp.float32),
        compiler_params=cp,
    )(pp4, w4e, act3, act3, act3)

    return out_pad[0, :N].reshape(B, L)


# --------------------------------------------------------------------------
# Pure-JAX reference & param init (for validation only)
# --------------------------------------------------------------------------
def tcn2_reference(X, params):
    (g1, be1, w1, b1, g2, be2, w2, b2,
     g3, be3, w3, b3, g4, be4, w4, b4) = params

    def bn(v, g, b):
        mean = v.mean(axis=(0, 2), keepdims=True)
        var = ((v - mean) ** 2).mean(axis=(0, 2), keepdims=True)
        return g[None, :, None] * (v - mean) * jax.lax.rsqrt(var + EPS) + b[None, :, None]

    def conv(v, w, b, d):
        out = jax.lax.conv_general_dilated(
            v, w, window_strides=(1,), padding=[(d, d)], rhs_dilation=(d,),
            dimension_numbers=('NCH', 'OIH', 'NCH'))
        return out + b[None, :, None]

    x = X[:, None, :]
    h = jax.nn.relu(conv(bn(x, g1, be1), w1, b1, 1))
    h = jax.nn.relu(conv(bn(h, g2, be2), w2, b2, 2))
    h = jax.nn.relu(conv(bn(h, g3, be3), w3, b3, 4))
    h = conv(bn(h, g4, be4), w4, b4, 8)
    return jax.nn.sigmoid(h)[:, 0, :]


def init_params(key, hidden_size):
    H = hidden_size
    ks = jax.random.split(key, 16)
    s = 0.1
    g1 = 1.0 + s * jax.random.normal(ks[0], (1,), jnp.float32)
    be1 = s * jax.random.normal(ks[1], (1,), jnp.float32)
    w1 = s * jax.random.normal(ks[2], (H, 1, 3), jnp.float32)
    b1 = s * jax.random.normal(ks[3], (H,), jnp.float32)
    g2 = 1.0 + s * jax.random.normal(ks[4], (H,), jnp.float32)
    be2 = s * jax.random.normal(ks[5], (H,), jnp.float32)
    w2 = s * jax.random.normal(ks[6], (H, H, 3), jnp.float32)
    b2 = s * jax.random.normal(ks[7], (H,), jnp.float32)
    g3 = 1.0 + s * jax.random.normal(ks[8], (H,), jnp.float32)
    be3 = s * jax.random.normal(ks[9], (H,), jnp.float32)
    w3 = s * jax.random.normal(ks[10], (H, H, 3), jnp.float32)
    b3 = s * jax.random.normal(ks[11], (H,), jnp.float32)
    g4 = 1.0 + s * jax.random.normal(ks[12], (H,), jnp.float32)
    be4 = s * jax.random.normal(ks[13], (H,), jnp.float32)
    w4 = s * jax.random.normal(ks[14], (1, H, 3), jnp.float32)
    b4 = s * jax.random.normal(ks[15], (1,), jnp.float32)
    return (g1, be1, w1, b1, g2, be2, w2, b2,
            g3, be3, w3, b3, g4, be4, w4, b4)


if __name__ == "__main__":
    B, L, H = 2, 128, 32   # batch=2, seq len=128, hidden=32
    key = jax.random.PRNGKey(0)
    kx, kp = jax.random.split(key)
    X = jax.random.normal(kx, (B, L), jnp.float32)
    params = init_params(kp, H)

    out = jax.block_until_ready(tcn2_forward(X, params, H))
    ref = jax.block_until_ready(tcn2_reference(X, params))

    assert out.shape == (B, L)
    err = float(jnp.max(jnp.abs(out - ref)))
    assert err < 5e-4, f"mismatch vs pure-JAX reference: max abs err = {err}"

    print("KERNEL_OK")
</pallas_src>

<mosaic_0001>
module attributes {stable_mosaic.version = 11 : i64} {
  func.func @_mid_kernel(%arg0: i32, %arg1: memref<32x2xf32, #tpu.memory_space<vmem>>, %arg2: memref<3x32x32xf32, #tpu.memory_space<vmem>>, %arg3: memref<32x256xf32, #tpu.memory_space<vmem>>, %arg4: memref<32x128xf32, #tpu.memory_space<vmem>>, %arg5: memref<32x128xf32, #tpu.memory_space<vmem>>, %arg6: memref<32x256xf32, #tpu.memory_space<vmem>>, %arg7: memref<1x32x2xf32, #tpu.memory_space<vmem>>) attributes {dimension_semantics = [#tpu.dimension_semantics<parallel>], iteration_bounds = array<i64: 1>, scalar_prefetch = 0 : i64, scratch_operands = 0 : i64, tpu.core_type = #tpu.core_type<tc>, window_params = [{pipeline_mode = #tpu.pipeline_mode<synchronous>, transform_indices = @transform_0, window_bounds = array<i64: 32, 2>}, {pipeline_mode = #tpu.pipeline_mode<synchronous>, transform_indices = @transform_1, window_bounds = array<i64: 3, 32, 32>}, {transform_indices = @transform_2, window_bounds = array<i64: 32, 256>}, {transform_indices = @transform_3, window_bounds = array<i64: 32, 128>}, {transform_indices = @transform_4, window_bounds = array<i64: 32, 128>}, {transform_indices = @transform_5, window_bounds = array<i64: 32, 256>}, {transform_indices = @transform_6, window_bounds = array<i64: 1, 32, 2>}]} {
    %0 = tpu.iota {dimensions = array<i32: 1>} : vector<1x128xi32>
    %1 = tpu.iota {dimensions = array<i32: 1>} : vector<1x256xi32>
    %c256_i32 = arith.constant 256 : i32
    %2 = arith.muli %arg0, %c256_i32 : i32
    %3 = vector.broadcast %2 : i32 to vector<1x256xi32>
    %4 = arith.addi %1, %3 : vector<1x256xi32>
    %c128_i32 = arith.constant 128 : i32
    %c0_i32 = arith.constant 0 : i32
    %5 = arith.cmpi eq, %c128_i32, %c0_i32 : i32
    %c1_i32 = arith.constant 1 : i32
    %6 = arith.select %5, %c1_i32, %c128_i32 : i32
    %7 = vector.broadcast %6 : i32 to vector<1x256xi32>
    %8 = arith.remsi %4, %7 : vector<1x256xi32>
    %c0_i32_0 = arith.constant 0 : i32
    %9 = vector.broadcast %c0_i32_0 : i32 to vector<1x256xi32>
    %10 = arith.cmpi ne, %8, %9 : vector<1x256xi32>
    %c0_i32_1 = arith.constant 0 : i32
    %11 = vector.broadcast %c0_i32_1 : i32 to vector<1x256xi32>
    %12 = arith.cmpi slt, %8, %11 : vector<1x256xi32>
    %c0_i32_2 = arith.constant 0 : i32
    %13 = arith.cmpi slt, %6, %c0_i32_2 : i32
    %14 = vector.broadcast %13 : i1 to vector<1x256xi1>
    %15 = vector.broadcast %14 : vector<1x256xi1> to vector<1x256xi1>
    %16 = arith.xori %12, %15 : vector<1x256xi1>
    %17 = arith.andi %16, %10 : vector<1x256xi1>
    %18 = vector.broadcast %6 : i32 to vector<1x256xi32>
    %19 = arith.addi %8, %18 : vector<1x256xi32>
    %20 = arith.select %17, %19, %8 : vector<1x256xi1>, vector<1x256xi32>
    %c2_i32 = arith.constant 2 : i32
    %21 = vector.broadcast %c2_i32 : i32 to vector<1x256xi32>
    %22 = arith.cmpi sge, %20, %21 : vector<1x256xi32>
    %c126_i32 = arith.constant 126 : i32
    %23 = vector.broadcast %c126_i32 : i32 to vector<1x256xi32>
    %24 = arith.cmpi slt, %20, %23 : vector<1x256xi32>
    %c256_i32_3 = arith.constant 256 : i32
    %25 = vector.broadcast %c256_i32_3 : i32 to vector<1x256xi32>
    %26 = arith.cmpi slt, %4, %25 : vector<1x256xi32>
    %c0 = arith.constant 0 : index
    %c0_4 = arith.constant 0 : index
    %27 = vector.load %arg1[%c0, %c0_4] : memref<32x2xf32, #tpu.memory_space<vmem>>, vector<32x2xf32>
    %28 = vector.extract_strided_slice %27 {offsets = [0, 0], sizes = [32, 1], strides = [1, 1]} : vector<32x2xf32> to vector<32x1xf32>
    %29 = vector.extract_strided_slice %27 {offsets = [0, 1], sizes = [32, 1], strides = [1, 1]} : vector<32x2xf32> to vector<32x1xf32>
    %c0_5 = arith.constant 0 : index
    %c0_6 = arith.constant 0 : index
    %30 = vector.load %arg3[%c0_5, %c0_6] : memref<32x256xf32, #tpu.memory_space<vmem>>, vector<32x256xf32>
    %c0_7 = arith.constant 0 : index
    %c0_8 = arith.constant 0 : index
    %31 = vector.load %arg4[%c0_7, %c0_8] : memref<32x128xf32, #tpu.memory_space<vmem>>, vector<32x128xf32>
    %c0_9 = arith.constant 0 : index
    %c0_10 = arith.constant 0 : index
    %32 = vector.load %arg5[%c0_9, %c0_10] : memref<32x128xf32, #tpu.memory_space<vmem>>, vector<32x128xf32>
    %c2_i32_11 = arith.constant 2 : i32
    %33 = tpu.dynamic_rotate %30 by %c2_i32_11 dim 1 : vector<32x256xf32>, i32 -> vector<32x256xf32>
    %c2_i32_12 = arith.constant 2 : i32
    %34 = tpu.dynamic_rotate %31 by %c2_i32_12 dim 1 : vector<32x128xf32>, i32 -> vector<32x128xf32>
    %c2_i32_13 = arith.constant 2 : i32
    %35 = vector.broadcast %c2_i32_13 : i32 to vector<1x128xi32>
    %36 = arith.cmpi slt, %0, %35 : vector<1x128xi32>
    %37 = vector.extract_strided_slice %33 {offsets = [0, 0], sizes = [32, 128], strides = [1, 1]} : vector<32x256xf32> to vector<32x128xf32>
    %38 = vector.shape_cast %36 : vector<1x128xi1> to vector<1x128xi1>
    %39 = vector.broadcast %38 : vector<1x128xi1> to vector<32x128xi1>
    %40 = arith.select %39, %34, %37 : vector<32x128xi1>, vector<32x128xf32>
    %41 = vector.extract_strided_slice %33 {offsets = [0, 128], sizes = [32, 128], strides = [1, 1]} : vector<32x256xf32> to vector<32x128xf32>
    %42 = tpu.concatenate %40, %41 in 1 : vector<32x128xf32>, vector<32x128xf32> -> vector<32x256xf32>
    %43 = vector.broadcast %28 : vector<32x1xf32> to vector<32x256xf32>
    %44 = arith.addf %42, %43 : vector<32x256xf32>
    %cst = arith.constant 0.000000e+00 : f32
    %45 = vector.shape_cast %22 : vector<1x256xi1> to vector<1x256xi1>
    %46 = vector.broadcast %45 : vector<1x256xi1> to vector<32x256xi1>
    %47 = vector.broadcast %cst : f32 to vector<32x256xf32>
    %48 = arith.select %46, %44, %47 : vector<32x256xi1>, vector<32x256xf32>
    %c254_i32 = arith.constant 254 : i32
    %49 = tpu.dynamic_rotate %30 by %c254_i32 dim 1 : vector<32x256xf32>, i32 -> vector<32x256xf32>
    %c126_i32_14 = arith.constant 126 : i32
    %50 = tpu.dynamic_rotate %32 by %c126_i32_14 dim 1 : vector<32x128xf32>, i32 -> vector<32x128xf32>
    %c126_i32_15 = arith.constant 126 : i32
    %51 = vector.broadcast %c126_i32_15 : i32 to vector<1x128xi32>
    %52 = arith.cmpi sge, %0, %51 : vector<1x128xi32>
    %53 = vector.extract_strided_slice %49 {offsets = [0, 128], sizes = [32, 128], strides = [1, 1]} : vector<32x256xf32> to vector<32x128xf32>
    %54 = vector.shape_cast %52 : vector<1x128xi1> to vector<1x128xi1>
    %55 = vector.broadcast %54 : vector<1x128xi1> to vector<32x128xi1>
    %56 = arith.select %55, %50, %53 : vector<32x128xi1>, vector<32x128xf32>
    %57 = vector.extract_strided_slice %49 {offsets = [0, 0], sizes = [32, 128], strides = [1, 1]} : vector<32x256xf32> to vector<32x128xf32>
    %58 = tpu.concatenate %57, %56 in 1 : vector<32x128xf32>, vector<32x128xf32> -> vector<32x256xf32>
    %59 = vector.broadcast %28 : vector<32x1xf32> to vector<32x256xf32>
    %60 = arith.addf %58, %59 : vector<32x256xf32>
    %cst_16 = arith.constant 0.000000e+00 : f32
    %61 = vector.shape_cast %24 : vector<1x256xi1> to vector<1x256xi1>
    %62 = vector.broadcast %61 : vector<1x256xi1> to vector<32x256xi1>
    %63 = vector.broadcast %cst_16 : f32 to vector<32x256xf32>
    %64 = arith.select %62, %60, %63 : vector<32x256xi1>, vector<32x256xf32>
    %c0_17 = arith.constant 0 : index
    %c0_18 = arith.constant 0 : index
    %c0_19 = arith.constant 0 : index
    %65 = vector.load %arg2[%c0_17, %c0_18, %c0_19] : memref<3x32x32xf32, #tpu.memory_space<vmem>>, vector<1x32x32xf32>
    %66 = vector.shape_cast %65 : vector<1x32x32xf32> to vector<32x32xf32>
    %cst_20 = arith.constant dense<0.000000e+00> : vector<32x256xf32>
    %67 = tpu.matmul %66, %48, %cst_20 {dimension_numbers = #tpu.dot_dimension_numbers<[1], [0], [0], [1], [0, 0, 1, 1], [], []>} : vector<32x32xf32>, vector<32x256xf32>, vector<32x256xf32> -> vector<32x256xf32>
    %c1 = arith.constant 1 : index
    %c0_21 = arith.constant 0 : index
    %c0_22 = arith.constant 0 : index
    %68 = vector.load %arg2[%c1, %c0_21, %c0_22] : memref<3x32x32xf32, #tpu.memory_space<vmem>>, vector<1x32x32xf32>
    %69 = vector.shape_cast %68 : vector<1x32x32xf32> to vector<32x32xf32>
    %70 = vector.broadcast %28 : vector<32x1xf32> to vector<32x256xf32>
    %71 = arith.addf %30, %70 : vector<32x256xf32>
    %cst_23 = arith.constant dense<0.000000e+00> : vector<32x256xf32>
    %72 = tpu.matmul %69, %71, %cst_23 {dimension_numbers = #tpu.dot_dimension_numbers<[1], [0], [0], [1], [0, 0, 1, 1], [], []>} : vector<32x32xf32>, vector<32x256xf32>, vector<32x256xf32> -> vector<32x256xf32>
    %73 = arith.addf %67, %72 : vector<32x256xf32>
    %c2 = arith.constant 2 : index
    %c0_24 = arith.constant 0 : index
    %c0_25 = arith.constant 0 : index
    %74 = vector.load %arg2[%c2, %c0_24, %c0_25] : memref<3x32x32xf32, #tpu.memory_space<vmem>>, vector<1x32x32xf32>
    %75 = vector.shape_cast %74 : vector<1x32x32xf32> to vector<32x32xf32>
    %cst_26 = arith.constant dense<0.000000e+00> : vector<32x256xf32>
    %76 = tpu.matmul %75, %64, %cst_26 {dimension_numbers = #tpu.dot_dimension_numbers<[1], [0], [0], [1], [0, 0, 1, 1], [], []>} : vector<32x32xf32>, vector<32x256xf32>, vector<32x256xf32> -> vector<32x256xf32>
    %77 = arith.addf %73, %76 : vector<32x256xf32>
    %78 = vector.broadcast %29 : vector<32x1xf32> to vector<32x256xf32>
    %79 = arith.addf %77, %78 : vector<32x256xf32>
    %cst_27 = arith.constant 0.000000e+00 : f32
    %80 = vector.broadcast %cst_27 : f32 to vector<32x256xf32>
    %81 = arith.maximumf %79, %80 : vector<32x256xf32>
    %cst_28 = arith.constant 0.000000e+00 : f32
    %82 = vector.shape_cast %26 : vector<1x256xi1> to vector<1x256xi1>
    %83 = vector.broadcast %82 : vector<1x256xi1> to vector<32x256xi1>
    %84 = vector.broadcast %cst_28 : f32 to vector<32x256xf32>
    %85 = arith.select %83, %81, %84 : vector<32x256xi1>, vector<32x256xf32>
    %c0_29 = arith.constant 0 : index
    %c0_30 = arith.constant 0 : index
    %86 = vector.load %arg6[%c0_29, %c0_30] : memref<32x256xf32, #tpu.memory_space<vmem>>, vector<32x256xf32>
    tpu.vector_store %arg6[%c0_29, %c0_30], %85 {strides = array<i32>} : memref<32x256xf32, #tpu.memory_space<vmem>>, vector<32x256xf32>,
    %cst_31 = arith.constant 1.000000e+00 : f32
    %87 = vector.broadcast %cst_31 : f32 to vector<256x1xf32>
    %cst_32 = arith.constant dense<0.000000e+00> : vector<32x1xf32>
    %88 = tpu.matmul %85, %87, %cst_32 {dimension_numbers = #tpu.dot_dimension_numbers<[1], [0], [0], [1], [0, 0, 1, 1], [], []>} : vector<32x256xf32>, vector<256x1xf32>, vector<32x1xf32> -> vector<32x1xf32>
    %89 = arith.mulf %85, %85 : vector<32x256xf32>
    %cst_33 = arith.constant dense<0.000000e+00> : vector<32x1xf32>
    %90 = tpu.matmul %89, %87, %cst_33 {dimension_numbers = #tpu.dot_dimension_numbers<[1], [0], [0], [1], [0, 0, 1, 1], [], []>} : vector<32x256xf32>, vector<256x1xf32>, vector<32x1xf32> -> vector<32x1xf32>
    %91 = tpu.concatenate %88, %90 in 1 : vector<32x1xf32>, vector<32x1xf32> -> vector<32x2xf32>
    %92 = vector.shape_cast %91 : vector<32x2xf32> to vector<1x32x2xf32>
    %c0_34 = arith.constant 0 : index
    %c0_35 = arith.constant 0 : index
    %c0_36 = arith.constant 0 : index
    %93 = vector.load %arg7[%c0_34, %c0_35, %c0_36] : memref<1x32x2xf32, #tpu.memory_space<vmem>>, vector<1x32x2xf32>
    tpu.vector_store %arg7[%c0_34, %c0_35, %c0_36], %92 {strides = array<i32>} : memref<1x32x2xf32, #tpu.memory_space<vmem>>, vector<1x32x2xf32>,
    return
  }
  func.func @transform_0(%arg0: i32) -> (i32, i32) {
    %c0_i32 = arith.constant 0 : i32
    %c0_i32_0 = arith.constant 0 : i32
    %c0_i32_1 = arith.constant 0 : i32
    return %c0_i32, %c0_i32_0 : i32, i32
  }
  func.func @transform_1(%arg0: i32) -> (i32, i32, i32) {
    %c0_i32 = arith.constant 0 : i32
    %c0_i32_0 = arith.constant 0 : i32
    %c0_i32_1 = arith.constant 0 : i32
    %c0_i32_2 = arith.constant 0 : i32
    return %c0_i32, %c0_i32_0, %c0_i32_1 : i32, i32, i32
  }
  func.func @transform_2(%arg0: i32) -> (i32, i32) {
    %c0_i32 = arith.constant 0 : i32
    %c0_i32_0 = arith.constant 0 : i32
    return %c0_i32, %arg0 : i32, i32
  }
  func.func @transform_3(%arg0: i32) -> (i32, i32) {
    %c2_i32 = arith.constant 2 : i32
    %0 = arith.muli %arg0, %c2_i32 : i32
    %c1_i32 = arith.constant 1 : i32
    %1 = arith.subi %0, %c1_i32 : i32
    %c0_i32 = arith.constant 0 : i32
    %2 = arith.maxsi %1, %c0_i32 : i32
    %c0_i32_0 = arith.constant 0 : i32
    %c0_i32_1 = arith.constant 0 : i32
    return %c0_i32_0, %2 : i32, i32
  }
  func.func @transform_4(%arg0: i32) -> (i32, i32) {
    %c1_i32 = arith.constant 1 : i32
    %0 = arith.addi %arg0, %c1_i32 : i32
    %c2_i32 = arith.constant 2 : i32
    %1 = arith.muli %0, %c2_i32 : i32
    %c1_i32_0 = arith.constant 1 : i32
    %2 = arith.minsi %1, %c1_i32_0 : i32
    %c0_i32 = arith.constant 0 : i32
    %c0_i32_1 = arith.constant 0 : i32
    return %c0_i32, %2 : i32, i32
  }
  func.func @transform_5(%arg0: i32) -> (i32, i32) {
    %c0_i32 = arith.constant 0 : i32
    %c0_i32_0 = arith.constant 0 : i32
    return %c0_i32, %arg0 : i32, i32
  }
  func.func @transform_6(%arg0: i32) -> (i32, i32, i32) {
    %c0_i32 = arith.constant 0 : i32
    %c0_i32_0 = arith.constant 0 : i32
    %c0_i32_1 = arith.constant 0 : i32
    return %arg0, %c0_i32, %c0_i32_0 : i32, i32, i32
  }
}

module attributes {stable_mosaic.version = 11 : i64} {
  func.func @_layer1_kernel(%arg0: i32, %arg1: memref<32x8xf32, #tpu.memory_space<vmem>>, %arg2: memref<1x256xf32, #tpu.memory_space<vmem>>, %arg3: memref<1x128xf32, #tpu.memory_space<vmem>>, %arg4: memref<1x128xf32, #tpu.memory_space<vmem>>, %arg5: memref<32x256xf32, #tpu.memory_space<vmem>>, %arg6: memref<1x32x2xf32, #tpu.memory_space<vmem>>) attributes {dimension_semantics = [#tpu.dimension_semantics<parallel>], iteration_bounds = array<i64: 1>, scalar_prefetch = 0 : i64, scratch_operands = 0 : i64, tpu.core_type = #tpu.core_type<tc>, window_params = [{pipeline_mode = #tpu.pipeline_mode<synchronous>, transform_indices = @transform_0, window_bounds = array<i64: 32, 8>}, {transform_indices = @transform_1, window_bounds = array<i64: 1, 256>}, {transform_indices = @transform_2, window_bounds = array<i64: 1, 128>}, {transform_indices = @transform_3, window_bounds = array<i64: 1, 128>}, {transform_indices = @transform_4, window_bounds = array<i64: 32, 256>}, {transform_indices = @transform_5, window_bounds = array<i64: 1, 32, 2>}]} {
    %0 = tpu.iota {dimensions = array<i32: 1>} : vector<1x128xi32>
    %1 = tpu.iota {dimensions = array<i32: 1>} : vector<1x256xi32>
    %c256_i32 = arith.constant 256 : i32
    %2 = arith.muli %arg0, %c256_i32 : i32
    %3 = vector.broadcast %2 : i32 to vector<1x256xi32>
    %4 = arith.addi %1, %3 : vector<1x256xi32>
    %c128_i32 = arith.constant 128 : i32
    %c0_i32 = arith.constant 0 : i32
    %5 = arith.cmpi eq, %c128_i32, %c0_i32 : i32
    %c1_i32 = arith.constant 1 : i32
    %6 = arith.select %5, %c1_i32, %c128_i32 : i32
    %7 = vector.broadcast %6 : i32 to vector<1x256xi32>
    %8 = arith.remsi %4, %7 : vector<1x256xi32>
    %c0_i32_0 = arith.constant 0 : i32
    %9 = vector.broadcast %c0_i32_0 : i32 to vector<1x256xi32>
    %10 = arith.cmpi ne, %8, %9 : vector<1x256xi32>
    %c0_i32_1 = arith.constant 0 : i32
    %11 = vector.broadcast %c0_i32_1 : i32 to vector<1x256xi32>
    %12 = arith.cmpi slt, %8, %11 : vector<1x256xi32>
    %c0_i32_2 = arith.constant 0 : i32
    %13 = arith.cmpi slt, %6, %c0_i32_2 : i32
    %14 = vector.broadcast %13 : i1 to vector<1x256xi1>
    %15 = vector.broadcast %14 : vector<1x256xi1> to vector<1x256xi1>
    %16 = arith.xori %12, %15 : vector<1x256xi1>
    %17 = arith.andi %16, %10 : vector<1x256xi1>
    %18 = vector.broadcast %6 : i32 to vector<1x256xi32>
    %19 = arith.addi %8, %18 : vector<1x256xi32>
    %20 = arith.select %17, %19, %8 : vector<1x256xi1>, vector<1x256xi32>
    %c1_i32_3 = arith.constant 1 : i32
    %21 = vector.broadcast %c1_i32_3 : i32 to vector<1x256xi32>
    %22 = arith.cmpi sge, %20, %21 : vector<1x256xi32>
    %c127_i32 = arith.constant 127 : i32
    %23 = vector.broadcast %c127_i32 : i32 to vector<1x256xi32>
    %24 = arith.cmpi slt, %20, %23 : vector<1x256xi32>
    %c256_i32_4 = arith.constant 256 : i32
    %25 = vector.broadcast %c256_i32_4 : i32 to vector<1x256xi32>
    %26 = arith.cmpi slt, %4, %25 : vector<1x256xi32>
    %c0 = arith.constant 0 : index
    %c0_5 = arith.constant 0 : index
    %27 = vector.load %arg1[%c0, %c0_5] : memref<32x8xf32, #tpu.memory_space<vmem>>, vector<32x8xf32>
    %28 = vector.extract_strided_slice %27 {offsets = [0, 0], sizes = [32, 3], strides = [1, 1]} : vector<32x8xf32> to vector<32x3xf32>
    %29 = vector.extract_strided_slice %27 {offsets = [0, 3], sizes = [32, 1], strides = [1, 1]} : vector<32x8xf32> to vector<32x1xf32>
    %30 = vector.extract_strided_slice %27 {offsets = [0, 4], sizes = [1, 1], strides = [1, 1]} : vector<32x8xf32> to vector<1x1xf32>
    %c0_6 = arith.constant 0 : index
    %c0_7 = arith.constant 0 : index
    %31 = vector.load %arg2[%c0_6, %c0_7] : memref<1x256xf32, #tpu.memory_space<vmem>>, vector<1x256xf32>
    %c0_8 = arith.constant 0 : index
    %c0_9 = arith.constant 0 : index
    %32 = vector.load %arg3[%c0_8, %c0_9] : memref<1x128xf32, #tpu.memory_space<vmem>>, vector<1x128xf32>
    %c0_10 = arith.constant 0 : index
    %c0_11 = arith.constant 0 : index
    %33 = vector.load %arg4[%c0_10, %c0_11] : memref<1x128xf32, #tpu.memory_space<vmem>>, vector<1x128xf32>
    %c1_i32_12 = arith.constant 1 : i32
    %34 = tpu.dynamic_rotate %31 by %c1_i32_12 dim 1 : vector<1x256xf32>, i32 -> vector<1x256xf32>
    %c1_i32_13 = arith.constant 1 : i32
    %35 = tpu.dynamic_rotate %32 by %c1_i32_13 dim 1 : vector<1x128xf32>, i32 -> vector<1x128xf32>
    %c1_i32_14 = arith.constant 1 : i32
    %36 = vector.broadcast %c1_i32_14 : i32 to vector<1x128xi32>
    %37 = arith.cmpi slt, %0, %36 : vector<1x128xi32>
    %38 = vector.extract_strided_slice %34 {offsets = [0, 0], sizes = [1, 128], strides = [1, 1]} : vector<1x256xf32> to vector<1x128xf32>
    %39 = arith.select %37, %35, %38 : vector<1x128xi1>, vector<1x128xf32>
    %40 = vector.extract_strided_slice %34 {offsets = [0, 128], sizes = [1, 128], strides = [1, 1]} : vector<1x256xf32> to vector<1x128xf32>
    %41 = tpu.concatenate %39, %40 in 1 : vector<1x128xf32>, vector<1x128xf32> -> vector<1x256xf32>
    %42 = vector.broadcast %30 : vector<1x1xf32> to vector<1x256xf32>
    %43 = arith.addf %41, %42 : vector<1x256xf32>
    %cst = arith.constant 0.000000e+00 : f32
    %44 = vector.broadcast %cst : f32 to vector<1x256xf32>
    %45 = arith.select %22, %43, %44 : vector<1x256xi1>, vector<1x256xf32>
    %c255_i32 = arith.constant 255 : i32
    %46 = tpu.dynamic_rotate %31 by %c255_i32 dim 1 : vector<1x256xf32>, i32 -> vector<1x256xf32>
    %c127_i32_15 = arith.constant 127 : i32
    %47 = tpu.dynamic_rotate %33 by %c127_i32_15 dim 1 : vector<1x128xf32>, i32 -> vector<1x128xf32>
    %c127_i32_16 = arith.constant 127 : i32
    %48 = vector.broadcast %c127_i32_16 : i32 to vector<1x128xi32>
    %49 = arith.cmpi sge, %0, %48 : vector<1x128xi32>
    %50 = vector.extract_strided_slice %46 {offsets = [0, 128], sizes = [1, 128], strides = [1, 1]} : vector<1x256xf32> to vector<1x128xf32>
    %51 = arith.select %49, %47, %50 : vector<1x128xi1>, vector<1x128xf32>
    %52 = vector.extract_strided_slice %46 {offsets = [0, 0], sizes = [1, 128], strides = [1, 1]} : vector<1x256xf32> to vector<1x128xf32>
    %53 = tpu.concatenate %52, %51 in 1 : vector<1x128xf32>, vector<1x128xf32> -> vector<1x256xf32>
    %54 = vector.broadcast %30 : vector<1x1xf32> to vector<1x256xf32>
    %55 = arith.addf %53, %54 : vector<1x256xf32>
    %cst_17 = arith.constant 0.000000e+00 : f32
    %56 = vector.broadcast %cst_17 : f32 to vector<1x256xf32>
    %57 = arith.select %24, %55, %56 : vector<1x256xi1>, vector<1x256xf32>
    %58 = vector.broadcast %30 : vector<1x1xf32> to vector<1x256xf32>
    %59 = arith.addf %31, %58 : vector<1x256xf32>
    %60 = vector.extract_strided_slice %28 {offsets = [0, 0], sizes = [32, 1], strides = [1, 1]} : vector<32x3xf32> to vector<32x1xf32>
    %61 = vector.broadcast %60 : vector<32x1xf32> to vector<32x256xf32>
    %62 = vector.broadcast %45 : vector<1x256xf32> to vector<32x256xf32>
    %63 = arith.mulf %61, %62 : vector<32x256xf32>
    %64 = vector.extract_strided_slice %28 {offsets = [0, 1], sizes = [32, 1], strides = [1, 1]} : vector<32x3xf32> to vector<32x1xf32>
    %65 = vector.broadcast %64 : vector<32x1xf32> to vector<32x256xf32>
    %66 = vector.broadcast %59 : vector<1x256xf32> to vector<32x256xf32>
    %67 = arith.mulf %65, %66 : vector<32x256xf32>
    %68 = arith.addf %63, %67 : vector<32x256xf32>
    %69 = vector.extract_strided_slice %28 {offsets = [0, 2], sizes = [32, 1], strides = [1, 1]} : vector<32x3xf32> to vector<32x1xf32>
    %70 = vector.broadcast %69 : vector<32x1xf32> to vector<32x256xf32>
    %71 = vector.broadcast %57 : vector<1x256xf32> to vector<32x256xf32>
    %72 = arith.mulf %70, %71 : vector<32x256xf32>
    %73 = arith.addf %68, %72 : vector<32x256xf32>
    %74 = vector.broadcast %29 : vector<32x1xf32> to vector<32x256xf32>
    %75 = arith.addf %73, %74 : vector<32x256xf32>
    %cst_18 = arith.constant 0.000000e+00 : f32
    %76 = vector.broadcast %cst_18 : f32 to vector<32x256xf32>
    %77 = arith.maximumf %75, %76 : vector<32x256xf32>
    %cst_19 = arith.constant 0.000000e+00 : f32
    %78 = vector.shape_cast %26 : vector<1x256xi1> to vector<1x256xi1>
    %79 = vector.broadcast %78 : vector<1x256xi1> to vector<32x256xi1>
    %80 = vector.broadcast %cst_19 : f32 to vector<32x256xf32>
    %81 = arith.select %79, %77, %80 : vector<32x256xi1>, vector<32x256xf32>
    %c0_20 = arith.constant 0 : index
    %c0_21 = arith.constant 0 : index
    %82 = vector.load %arg5[%c0_20, %c0_21] : memref<32x256xf32, #tpu.memory_space<vmem>>, vector<32x256xf32>
    tpu.vector_store %arg5[%c0_20, %c0_21], %81 {strides = array<i32>} : memref<32x256xf32, #tpu.memory_space<vmem>>, vector<32x256xf32>,
    %cst_22 = arith.constant 1.000000e+00 : f32
    %83 = vector.broadcast %cst_22 : f32 to vector<256x1xf32>
    %cst_23 = arith.constant dense<0.000000e+00> : vector<32x1xf32>
    %84 = tpu.matmul %81, %83, %cst_23 {dimension_numbers = #tpu.dot_dimension_numbers<[1], [0], [0], [1], [0, 0, 1, 1], [], []>} : vector<32x256xf32>, vector<256x1xf32>, vector<32x1xf32> -> vector<32x1xf32>
    %85 = arith.mulf %81, %81 : vector<32x256xf32>
    %cst_24 = arith.constant dense<0.000000e+00> : vector<32x1xf32>
    %86 = tpu.matmul %85, %83, %cst_24 {dimension_numbers = #tpu.dot_dimension_numbers<[1], [0], [0], [1], [0, 0, 1, 1], [], []>} : vector<32x256xf32>, vector<256x1xf32>, vector<32x1xf32> -> vector<32x1xf32>
    %87 = tpu.concatenate %84, %86 in 1 : vector<32x1xf32>, vector<32x1xf32> -> vector<32x2xf32>
    %88 = vector.shape_cast %87 : vector<32x2xf32> to vector<1x32x2xf32>
    %c0_25 = arith.constant 0 : index
    %c0_26 = arith.constant 0 : index
    %c0_27 = arith.constant 0 : index
    %89 = vector.load %arg6[%c0_25, %c0_26, %c0_27] : memref<1x32x2xf32, #tpu.memory_space<vmem>>, vector<1x32x2xf32>
    tpu.vector_store %arg6[%c0_25, %c0_26, %c0_27], %88 {strides = array<i32>} : memref<1x32x2xf32, #tpu.memory_space<vmem>>, vector<1x32x2xf32>,
    return
  }
  func.func @transform_0(%arg0: i32) -> (i32, i32) {
    %c0_i32 = arith.constant 0 : i32
    %c0_i32_0 = arith.constant 0 : i32
    %c0_i32_1 = arith.constant 0 : i32
    return %c0_i32, %c0_i32_0 : i32, i32
  }
  func.func @transform_1(%arg0: i32) -> (i32, i32) {
    %c0_i32 = arith.constant 0 : i32
    %c0_i32_0 = arith.constant 0 : i32
    return %c0_i32, %arg0 : i32, i32
  }
  func.func @transform_2(%arg0: i32) -> (i32, i32) {
    %c2_i32 = arith.constant 2 : i32
    %0 = arith.muli %arg0, %c2_i32 : i32
    %c1_i32 = arith.constant 1 : i32
    %1 = arith.subi %0, %c1_i32 : i32
    %c0_i32 = arith.constant 0 : i32
    %2 = arith.maxsi %1, %c0_i32 : i32
    %c0_i32_0 = arith.constant 0 : i32
    %c0_i32_1 = arith.constant 0 : i32
    return %c0_i32_0, %2 : i32, i32
  }
  func.func @transform_3(%arg0: i32) -> (i32, i32) {
    %c1_i32 = arith.constant 1 : i32
    %0 = arith.addi %arg0, %c1_i32 : i32
    %c2_i32 = arith.constant 2 : i32
    %1 = arith.muli %0, %c2_i32 : i32
    %c1_i32_0 = arith.constant 1 : i32
    %2 = arith.minsi %1, %c1_i32_0 : i32
    %c0_i32 = arith.constant 0 : i32
    %c0_i32_1 = arith.constant 0 : i32
    return %c0_i32, %2 : i32, i32
  }
  func.func @transform_4(%arg0: i32) -> (i32, i32) {
    %c0_i32 = arith.constant 0 : i32
    %c0_i32_0 = arith.constant 0 : i32
    return %c0_i32, %arg0 : i32, i32
  }
  func.func @transform_5(%arg0: i32) -> (i32, i32, i32) {
    %c0_i32 = arith.constant 0 : i32
    %c0_i32_0 = arith.constant 0 : i32
    %c0_i32_1 = arith.constant 0 : i32
    return %arg0, %c0_i32, %c0_i32_0 : i32, i32, i32
  }
}

module attributes {stable_mosaic.version = 11 : i64} {
  func.func @_mid_kernel(%arg0: i32, %arg1: memref<32x2xf32, #tpu.memory_space<vmem>>, %arg2: memref<3x32x32xf32, #tpu.memory_space<vmem>>, %arg3: memref<32x256xf32, #tpu.memory_space<vmem>>, %arg4: memref<32x128xf32, #tpu.memory_space<vmem>>, %arg5: memref<32x128xf32, #tpu.memory_space<vmem>>, %arg6: memref<32x256xf32, #tpu.memory_space<vmem>>, %arg7: memref<1x32x2xf32, #tpu.memory_space<vmem>>) attributes {dimension_semantics = [#tpu.dimension_semantics<parallel>], iteration_bounds = array<i64: 1>, scalar_prefetch = 0 : i64, scratch_operands = 0 : i64, tpu.core_type = #tpu.core_type<tc>, window_params = [{pipeline_mode = #tpu.pipeline_mode<synchronous>, transform_indices = @transform_0, window_bounds = array<i64: 32, 2>}, {pipeline_mode = #tpu.pipeline_mode<synchronous>, transform_indices = @transform_1, window_bounds = array<i64: 3, 32, 32>}, {transform_indices = @transform_2, window_bounds = array<i64: 32, 256>}, {transform_indices = @transform_3, window_bounds = array<i64: 32, 128>}, {transform_indices = @transform_4, window_bounds = array<i64: 32, 128>}, {transform_indices = @transform_5, window_bounds = array<i64: 32, 256>}, {transform_indices = @transform_6, window_bounds = array<i64: 1, 32, 2>}]} {
    %0 = tpu.iota {dimensions = array<i32: 1>} : vector<1x128xi32>
    %1 = tpu.iota {dimensions = array<i32: 1>} : vector<1x256xi32>
    %c256_i32 = arith.constant 256 : i32
    %2 = arith.muli %arg0, %c256_i32 : i32
    %3 = vector.broadcast %2 : i32 to vector<1x256xi32>
    %4 = arith.addi %1, %3 : vector<1x256xi32>
    %c128_i32 = arith.constant 128 : i32
    %c0_i32 = arith.constant 0 : i32
    %5 = arith.cmpi eq, %c128_i32, %c0_i32 : i32
    %c1_i32 = arith.constant 1 : i32
    %6 = arith.select %5, %c1_i32, %c128_i32 : i32
    %7 = vector.broadcast %6 : i32 to vector<1x256xi32>
    %8 = arith.remsi %4, %7 : vector<1x256xi32>
    %c0_i32_0 = arith.constant 0 : i32
    %9 = vector.broadcast %c0_i32_0 : i32 to vector<1x256xi32>
    %10 = arith.cmpi ne, %8, %9 : vector<1x256xi32>
    %c0_i32_1 = arith.constant 0 : i32
    %11 = vector.broadcast %c0_i32_1 : i32 to vector<1x256xi32>
    %12 = arith.cmpi slt, %8, %11 : vector<1x256xi32>
    %c0_i32_2 = arith.constant 0 : i32
    %13 = arith.cmpi slt, %6, %c0_i32_2 : i32
    %14 = vector.broadcast %13 : i1 to vector<1x256xi1>
    %15 = vector.broadcast %14 : vector<1x256xi1> to vector<1x256xi1>
    %16 = arith.xori %12, %15 : vector<1x256xi1>
    %17 = arith.andi %16, %10 : vector<1x256xi1>
    %18 = vector.broadcast %6 : i32 to vector<1x256xi32>
    %19 = arith.addi %8, %18 : vector<1x256xi32>
    %20 = arith.select %17, %19, %8 : vector<1x256xi1>, vector<1x256xi32>
    %c4_i32 = arith.constant 4 : i32
    %21 = vector.broadcast %c4_i32 : i32 to vector<1x256xi32>
    %22 = arith.cmpi sge, %20, %21 : vector<1x256xi32>
    %c124_i32 = arith.constant 124 : i32
    %23 = vector.broadcast %c124_i32 : i32 to vector<1x256xi32>
    %24 = arith.cmpi slt, %20, %23 : vector<1x256xi32>
    %c256_i32_3 = arith.constant 256 : i32
    %25 = vector.broadcast %c256_i32_3 : i32 to vector<1x256xi32>
    %26 = arith.cmpi slt, %4, %25 : vector<1x256xi32>
    %c0 = arith.constant 0 : index
    %c0_4 = arith.constant 0 : index
    %27 = vector.load %arg1[%c0, %c0_4] : memref<32x2xf32, #tpu.memory_space<vmem>>, vector<32x2xf32>
    %28 = vector.extract_strided_slice %27 {offsets = [0, 0], sizes = [32, 1], strides = [1, 1]} : vector<32x2xf32> to vector<32x1xf32>
    %29 = vector.extract_strided_slice %27 {offsets = [0, 1], sizes = [32, 1], strides = [1, 1]} : vector<32x2xf32> to vector<32x1xf32>
    %c0_5 = arith.constant 0 : index
    %c0_6 = arith.constant 0 : index
    %30 = vector.load %arg3[%c0_5, %c0_6] : memref<32x256xf32, #tpu.memory_space<vmem>>, vector<32x256xf32>
    %c0_7 = arith.constant 0 : index
    %c0_8 = arith.constant 0 : index
    %31 = vector.load %arg4[%c0_7, %c0_8] : memref<32x128xf32, #tpu.memory_space<vmem>>, vector<32x128xf32>
    %c0_9 = arith.constant 0 : index
    %c0_10 = arith.constant 0 : index
    %32 = vector.load %arg5[%c0_9, %c0_10] : memref<32x128xf32, #tpu.memory_space<vmem>>, vector<32x128xf32>
    %c4_i32_11 = arith.constant 4 : i32
    %33 = tpu.dynamic_rotate %30 by %c4_i32_11 dim 1 : vector<32x256xf32>, i32 -> vector<32x256xf32>
    %c4_i32_12 = arith.constant 4 : i32
    %34 = tpu.dynamic_rotate %31 by %c4_i32_12 dim 1 : vector<32x128xf32>, i32 -> vector<32x128xf32>
    %c4_i32_13 = arith.constant 4 : i32
    %35 = vector.broadcast %c4_i32_13 : i32 to vector<1x128xi32>
    %36 = arith.cmpi slt, %0, %35 : vector<1x128xi32>
    %37 = vector.extract_strided_slice %33 {offsets = [0, 0], sizes = [32, 128], strides = [1, 1]} : vector<32x256xf32> to vector<32x128xf32>
    %38 = vector.shape_cast %36 : vector<1x128xi1> to vector<1x128xi1>
    %39 = vector.broadcast %38 : vector<1x128xi1> to vector<32x128xi1>
    %40 = arith.select %39, %34, %37 : vector<32x128xi1>, vector<32x128xf32>
    %41 = vector.extract_strided_slice %33 {offsets = [0, 128], sizes = [32, 128], strides = [1, 1]} : vector<32x256xf32> to vector<32x128xf32>
    %42 = tpu.concatenate %40, %41 in 1 : vector<32x128xf32>, vector<32x128xf32> -> vector<32x256xf32>
    %43 = vector.broadcast %28 : vector<32x1xf32> to vector<32x256xf32>
    %44 = arith.addf %42, %43 : vector<32x256xf32>
    %cst = arith.constant 0.000000e+00 : f32
    %45 = vector.shape_cast %22 : vector<1x256xi1> to vector<1x256xi1>
    %46 = vector.broadcast %45 : vector<1x256xi1> to vector<32x256xi1>
    %47 = vector.broadcast %cst : f32 to vector<32x256xf32>
    %48 = arith.select %46, %44, %47 : vector<32x256xi1>, vector<32x256xf32>
    %c252_i32 = arith.constant 252 : i32
    %49 = tpu.dynamic_rotate %30 by %c252_i32 dim 1 : vector<32x256xf32>, i32 -> vector<32x256xf32>
    %c124_i32_14 = arith.constant 124 : i32
    %50 = tpu.dynamic_rotate %32 by %c124_i32_14 dim 1 : vector<32x128xf32>, i32 -> vector<32x128xf32>
    %c124_i32_15 = arith.constant 124 : i32
    %51 = vector.broadcast %c124_i32_15 : i32 to vector<1x128xi32>
    %52 = arith.cmpi sge, %0, %51 : vector<1x128xi32>
    %53 = vector.extract_strided_slice %49 {offsets = [0, 128], sizes = [32, 128], strides = [1, 1]} : vector<32x256xf32> to vector<32x128xf32>
    %54 = vector.shape_cast %52 : vector<1x128xi1> to vector<1x128xi1>
    %55 = vector.broadcast %54 : vector<1x128xi1> to vector<32x128xi1>
    %56 = arith.select %55, %50, %53 : vector<32x128xi1>, vector<32x128xf32>
    %57 = vector.extract_strided_slice %49 {offsets = [0, 0], sizes = [32, 128], strides = [1, 1]} : vector<32x256xf32> to vector<32x128xf32>
    %58 = tpu.concatenate %57, %56 in 1 : vector<32x128xf32>, vector<32x128xf32> -> vector<32x256xf32>
    %59 = vector.broadcast %28 : vector<32x1xf32> to vector<32x256xf32>
    %60 = arith.addf %58, %59 : vector<32x256xf32>
    %cst_16 = arith.constant 0.000000e+00 : f32
    %61 = vector.shape_cast %24 : vector<1x256xi1> to vector<1x256xi1>
    %62 = vector.broadcast %61 : vector<1x256xi1> to vector<32x256xi1>
    %63 = vector.broadcast %cst_16 : f32 to vector<32x256xf32>
    %64 = arith.select %62, %60, %63 : vector<32x256xi1>, vector<32x256xf32>
    %c0_17 = arith.constant 0 : index
    %c0_18 = arith.constant 0 : index
    %c0_19 = arith.constant 0 : index
    %65 = vector.load %arg2[%c0_17, %c0_18, %c0_19] : memref<3x32x32xf32, #tpu.memory_space<vmem>>, vector<1x32x32xf32>
    %66 = vector.shape_cast %65 : vector<1x32x32xf32> to vector<32x32xf32>
    %cst_20 = arith.constant dense<0.000000e+00> : vector<32x256xf32>
    %67 = tpu.matmul %66, %48, %cst_20 {dimension_numbers = #tpu.dot_dimension_numbers<[1], [0], [0], [1], [0, 0, 1, 1], [], []>} : vector<32x32xf32>, vector<32x256xf32>, vector<32x256xf32> -> vector<32x256xf32>
    %c1 = arith.constant 1 : index
    %c0_21 = arith.constant 0 : index
    %c0_22 = arith.constant 0 : index
    %68 = vector.load %arg2[%c1, %c0_21, %c0_22] : memref<3x32x32xf32, #tpu.memory_space<vmem>>, vector<1x32x32xf32>
    %69 = vector.shape_cast %68 : vector<1x32x32xf32> to vector<32x32xf32>
    %70 = vector.broadcast %28 : vector<32x1xf32> to vector<32x256xf32>
    %71 = arith.addf %30, %70 : vector<32x256xf32>
    %cst_23 = arith.constant dense<0.000000e+00> : vector<32x256xf32>
    %72 = tpu.matmul %69, %71, %cst_23 {dimension_numbers = #tpu.dot_dimension_numbers<[1], [0], [0], [1], [0, 0, 1, 1], [], []>} : vector<32x32xf32>, vector<32x256xf32>, vector<32x256xf32> -> vector<32x256xf32>
    %73 = arith.addf %67, %72 : vector<32x256xf32>
    %c2 = arith.constant 2 : index
    %c0_24 = arith.constant 0 : index
    %c0_25 = arith.constant 0 : index
    %74 = vector.load %arg2[%c2, %c0_24, %c0_25] : memref<3x32x32xf32, #tpu.memory_space<vmem>>, vector<1x32x32xf32>
    %75 = vector.shape_cast %74 : vector<1x32x32xf32> to vector<32x32xf32>
    %cst_26 = arith.constant dense<0.000000e+00> : vector<32x256xf32>
    %76 = tpu.matmul %75, %64, %cst_26 {dimension_numbers = #tpu.dot_dimension_numbers<[1], [0], [0], [1], [0, 0, 1, 1], [], []>} : vector<32x32xf32>, vector<32x256xf32>, vector<32x256xf32> -> vector<32x256xf32>
    %77 = arith.addf %73, %76 : vector<32x256xf32>
    %78 = vector.broadcast %29 : vector<32x1xf32> to vector<32x256xf32>
    %79 = arith.addf %77, %78 : vector<32x256xf32>
    %cst_27 = arith.constant 0.000000e+00 : f32
    %80 = vector.broadcast %cst_27 : f32 to vector<32x256xf32>
    %81 = arith.maximumf %79, %80 : vector<32x256xf32>
    %cst_28 = arith.constant 0.000000e+00 : f32
    %82 = vector.shape_cast %26 : vector<1x256xi1> to vector<1x256xi1>
    %83 = vector.broadcast %82 : vector<1x256xi1> to vector<32x256xi1>
    %84 = vector.broadcast %cst_28 : f32 to vector<32x256xf32>
    %85 = arith.select %83, %81, %84 : vector<32x256xi1>, vector<32x256xf32>
    %c0_29 = arith.constant 0 : index
    %c0_30 = arith.constant 0 : index
    %86 = vector.load %arg6[%c0_29, %c0_30] : memref<32x256xf32, #tpu.memory_space<vmem>>, vector<32x256xf32>
    tpu.vector_store %arg6[%c0_29, %c0_30], %85 {strides = array<i32>} : memref<32x256xf32, #tpu.memory_space<vmem>>, vector<32x256xf32>,
    %cst_31 = arith.constant 1.000000e+00 : f32
    %87 = vector.broadcast %cst_31 : f32 to vector<256x1xf32>
    %cst_32 = arith.constant dense<0.000000e+00> : vector<32x1xf32>
    %88 = tpu.matmul %85, %87, %cst_32 {dimension_numbers = #tpu.dot_dimension_numbers<[1], [0], [0], [1], [0, 0, 1, 1], [], []>} : vector<32x256xf32>, vector<256x1xf32>, vector<32x1xf32> -> vector<32x1xf32>
    %89 = arith.mulf %85, %85 : vector<32x256xf32>
    %cst_33 = arith.constant dense<0.000000e+00> : vector<32x1xf32>
    %90 = tpu.matmul %89, %87, %cst_33 {dimension_numbers = #tpu.dot_dimension_numbers<[1], [0], [0], [1], [0, 0, 1, 1], [], []>} : vector<32x256xf32>, vector<256x1xf32>, vector<32x1xf32> -> vector<32x1xf32>
    %91 = tpu.concatenate %88, %90 in 1 : vector<32x1xf32>, vector<32x1xf32> -> vector<32x2xf32>
    %92 = vector.shape_cast %91 : vector<32x2xf32> to vector<1x32x2xf32>
    %c0_34 = arith.constant 0 : index
    %c0_35 = arith.constant 0 : index
    %c0_36 = arith.constant 0 : index
    %93 = vector.load %arg7[%c0_34, %c0_35, %c0_36] : memref<1x32x2xf32, #tpu.memory_space<vmem>>, vector<1x32x2xf32>
    tpu.vector_store %arg7[%c0_34, %c0_35, %c0_36], %92 {strides = array<i32>} : memref<1x32x2xf32, #tpu.memory_space<vmem>>, vector<1x32x2xf32>,
    return
  }
  func.func @transform_0(%arg0: i32) -> (i32, i32) {
    %c0_i32 = arith.constant 0 : i32
    %c0_i32_0 = arith.constant 0 : i32
    %c0_i32_1 = arith.constant 0 : i32
    return %c0_i32, %c0_i32_0 : i32, i32
  }
  func.func @transform_1(%arg0: i32) -> (i32, i32, i32) {
    %c0_i32 = arith.constant 0 : i32
    %c0_i32_0 = arith.constant 0 : i32
    %c0_i32_1 = arith.constant 0 : i32
    %c0_i32_2 = arith.constant 0 : i32
    return %c0_i32, %c0_i32_0, %c0_i32_1 : i32, i32, i32
  }
  func.func @transform_2(%arg0: i32) -> (i32, i32) {
    %c0_i32 = arith.constant 0 : i32
    %c0_i32_0 = arith.constant 0 : i32
    return %c0_i32, %arg0 : i32, i32
  }
  func.func @transform_3(%arg0: i32) -> (i32, i32) {
    %c2_i32 = arith.constant 2 : i32
    %0 = arith.muli %arg0, %c2_i32 : i32
    %c1_i32 = arith.constant 1 : i32
    %1 = arith.subi %0, %c1_i32 : i32
    %c0_i32 = arith.constant 0 : i32
    %2 = arith.maxsi %1, %c0_i32 : i32
    %c0_i32_0 = arith.constant 0 : i32
    %c0_i32_1 = arith.constant 0 : i32
    return %c0_i32_0, %2 : i32, i32
  }
  func.func @transform_4(%arg0: i32) -> (i32, i32) {
    %c1_i32 = arith.constant 1 : i32
    %0 = arith.addi %arg0, %c1_i32 : i32
    %c2_i32 = arith.constant 2 : i32
    %1 = arith.muli %0, %c2_i32 : i32
    %c1_i32_0 = arith.constant 1 : i32
    %2 = arith.minsi %1, %c1_i32_0 : i32
    %c0_i32 = arith.constant 0 : i32
    %c0_i32_1 = arith.constant 0 : i32
    return %c0_i32, %2 : i32, i32
  }
  func.func @transform_5(%arg0: i32) -> (i32, i32) {
    %c0_i32 = arith.constant 0 : i32
    %c0_i32_0 = arith.constant 0 : i32
    return %c0_i32, %arg0 : i32, i32
  }
  func.func @transform_6(%arg0: i32) -> (i32, i32, i32) {
    %c0_i32 = arith.constant 0 : i32
    %c0_i32_0 = arith.constant 0 : i32
    %c0_i32_1 = arith.constant 0 : i32
    return %arg0, %c0_i32, %c0_i32_0 : i32, i32, i32
  }
}

module attributes {stable_mosaic.version = 11 : i64} {
  func.func @_final_kernel(%arg0: i32, %arg1: memref<32x2xf32, #tpu.memory_space<vmem>>, %arg2: memref<3x1x32xf32, #tpu.memory_space<vmem>>, %arg3: memref<32x256xf32, #tpu.memory_space<vmem>>, %arg4: memref<32x128xf32, #tpu.memory_space<vmem>>, %arg5: memref<32x128xf32, #tpu.memory_space<vmem>>, %arg6: memref<1x256xf32, #tpu.memory_space<vmem>>) attributes {dimension_semantics = [#tpu.dimension_semantics<parallel>], iteration_bounds = array<i64: 1>, scalar_prefetch = 0 : i64, scratch_operands = 0 : i64, tpu.core_type = #tpu.core_type<tc>, window_params = [{pipeline_mode = #tpu.pipeline_mode<synchronous>, transform_indices = @transform_0, window_bounds = array<i64: 32, 2>}, {pipeline_mode = #tpu.pipeline_mode<synchronous>, transform_indices = @transform_1, window_bounds = array<i64: 3, 1, 32>}, {transform_indices = @transform_2, window_bounds = array<i64: 32, 256>}, {transform_indices = @transform_3, window_bounds = array<i64: 32, 128>}, {transform_indices = @transform_4, window_bounds = array<i64: 32, 128>}, {transform_indices = @transform_5, window_bounds = array<i64: 1, 256>}]} {
    %0 = tpu.iota {dimensions = array<i32: 1>} : vector<1x128xi32>
    %1 = tpu.iota {dimensions = array<i32: 1>} : vector<1x256xi32>
    %c256_i32 = arith.constant 256 : i32
    %2 = arith.muli %arg0, %c256_i32 : i32
    %3 = vector.broadcast %2 : i32 to vector<1x256xi32>
    %4 = arith.addi %1, %3 : vector<1x256xi32>
    %c128_i32 = arith.constant 128 : i32
    %c0_i32 = arith.constant 0 : i32
    %5 = arith.cmpi eq, %c128_i32, %c0_i32 : i32
    %c1_i32 = arith.constant 1 : i32
    %6 = arith.select %5, %c1_i32, %c128_i32 : i32
    %7 = vector.broadcast %6 : i32 to vector<1x256xi32>
    %8 = arith.remsi %4, %7 : vector<1x256xi32>
    %c0_i32_0 = arith.constant 0 : i32
    %9 = vector.broadcast %c0_i32_0 : i32 to vector<1x256xi32>
    %10 = arith.cmpi ne, %8, %9 : vector<1x256xi32>
    %c0_i32_1 = arith.constant 0 : i32
    %11 = vector.broadcast %c0_i32_1 : i32 to vector<1x256xi32>
    %12 = arith.cmpi slt, %8, %11 : vector<1x256xi32>
    %c0_i32_2 = arith.constant 0 : i32
    %13 = arith.cmpi slt, %6, %c0_i32_2 : i32
    %14 = vector.broadcast %13 : i1 to vector<1x256xi1>
    %15 = vector.broadcast %14 : vector<1x256xi1> to vector<1x256xi1>
    %16 = arith.xori %12, %15 : vector<1x256xi1>
    %17 = arith.andi %16, %10 : vector<1x256xi1>
    %18 = vector.broadcast %6 : i32 to vector<1x256xi32>
    %19 = arith.addi %8, %18 : vector<1x256xi32>
    %20 = arith.select %17, %19, %8 : vector<1x256xi1>, vector<1x256xi32>
    %c8_i32 = arith.constant 8 : i32
    %21 = vector.broadcast %c8_i32 : i32 to vector<1x256xi32>
    %22 = arith.cmpi sge, %20, %21 : vector<1x256xi32>
    %c120_i32 = arith.constant 120 : i32
    %23 = vector.broadcast %c120_i32 : i32 to vector<1x256xi32>
    %24 = arith.cmpi slt, %20, %23 : vector<1x256xi32>
    %c0 = arith.constant 0 : index
    %c0_3 = arith.constant 0 : index
    %25 = vector.load %arg1[%c0, %c0_3] : memref<32x2xf32, #tpu.memory_space<vmem>>, vector<32x2xf32>
    %26 = vector.extract_strided_slice %25 {offsets = [0, 0], sizes = [32, 1], strides = [1, 1]} : vector<32x2xf32> to vector<32x1xf32>
    %27 = vector.extract_strided_slice %25 {offsets = [0, 1], sizes = [1, 1], strides = [1, 1]} : vector<32x2xf32> to vector<1x1xf32>
    %c0_4 = arith.constant 0 : index
    %c0_5 = arith.constant 0 : index
    %28 = vector.load %arg3[%c0_4, %c0_5] : memref<32x256xf32, #tpu.memory_space<vmem>>, vector<32x256xf32>
    %c0_6 = arith.constant 0 : index
    %c0_7 = arith.constant 0 : index
    %29 = vector.load %arg4[%c0_6, %c0_7] : memref<32x128xf32, #tpu.memory_space<vmem>>, vector<32x128xf32>
    %c0_8 = arith.constant 0 : index
    %c0_9 = arith.constant 0 : index
    %30 = vector.load %arg5[%c0_8, %c0_9] : memref<32x128xf32, #tpu.memory_space<vmem>>, vector<32x128xf32>
    %c8_i32_10 = arith.constant 8 : i32
    %31 = tpu.dynamic_rotate %28 by %c8_i32_10 dim 1 : vector<32x256xf32>, i32 -> vector<32x256xf32>
    %c8_i32_11 = arith.constant 8 : i32
    %32 = tpu.dynamic_rotate %29 by %c8_i32_11 dim 1 : vector<32x128xf32>, i32 -> vector<32x128xf32>
    %c8_i32_12 = arith.constant 8 : i32
    %33 = vector.broadcast %c8_i32_12 : i32 to vector<1x128xi32>
    %34 = arith.cmpi slt, %0, %33 : vector<1x128xi32>
    %35 = vector.extract_strided_slice %31 {offsets = [0, 0], sizes = [32, 128], strides = [1, 1]} : vector<32x256xf32> to vector<32x128xf32>
    %36 = vector.shape_cast %34 : vector<1x128xi1> to vector<1x128xi1>
    %37 = vector.broadcast %36 : vector<1x128xi1> to vector<32x128xi1>
    %38 = arith.select %37, %32, %35 : vector<32x128xi1>, vector<32x128xf32>
    %39 = vector.extract_strided_slice %31 {offsets = [0, 128], sizes = [32, 128], strides = [1, 1]} : vector<32x256xf32> to vector<32x128xf32>
    %40 = tpu.concatenate %38, %39 in 1 : vector<32x128xf32>, vector<32x128xf32> -> vector<32x256xf32>
    %41 = vector.broadcast %26 : vector<32x1xf32> to vector<32x256xf32>
    %42 = arith.addf %40, %41 : vector<32x256xf32>
    %cst = arith.constant 0.000000e+00 : f32
    %43 = vector.shape_cast %22 : vector<1x256xi1> to vector<1x256xi1>
    %44 = vector.broadcast %43 : vector<1x256xi1> to vector<32x256xi1>
    %45 = vector.broadcast %cst : f32 to vector<32x256xf32>
    %46 = arith.select %44, %42, %45 : vector<32x256xi1>, vector<32x256xf32>
    %c248_i32 = arith.constant 248 : i32
    %47 = tpu.dynamic_rotate %28 by %c248_i32 dim 1 : vector<32x256xf32>, i32 -> vector<32x256xf32>
    %c120_i32_13 = arith.constant 120 : i32
    %48 = tpu.dynamic_rotate %30 by %c120_i32_13 dim 1 : vector<32x128xf32>, i32 -> vector<32x128xf32>
    %c120_i32_14 = arith.constant 120 : i32
    %49 = vector.broadcast %c120_i32_14 : i32 to vector<1x128xi32>
    %50 = arith.cmpi sge, %0, %49 : vector<1x128xi32>
    %51 = vector.extract_strided_slice %47 {offsets = [0, 128], sizes = [32, 128], strides = [1, 1]} : vector<32x256xf32> to vector<32x128xf32>
    %52 = vector.shape_cast %50 : vector<1x128xi1> to vector<1x128xi1>
    %53 = vector.broadcast %52 : vector<1x128xi1> to vector<32x128xi1>
    %54 = arith.select %53, %48, %51 : vector<32x128xi1>, vector<32x128xf32>
    %55 = vector.extract_strided_slice %47 {offsets = [0, 0], sizes = [32, 128], strides = [1, 1]} : vector<32x256xf32> to vector<32x128xf32>
    %56 = tpu.concatenate %55, %54 in 1 : vector<32x128xf32>, vector<32x128xf32> -> vector<32x256xf32>
    %57 = vector.broadcast %26 : vector<32x1xf32> to vector<32x256xf32>
    %58 = arith.addf %56, %57 : vector<32x256xf32>
    %cst_15 = arith.constant 0.000000e+00 : f32
    %59 = vector.shape_cast %24 : vector<1x256xi1> to vector<1x256xi1>
    %60 = vector.broadcast %59 : vector<1x256xi1> to vector<32x256xi1>
    %61 = vector.broadcast %cst_15 : f32 to vector<32x256xf32>
    %62 = arith.select %60, %58, %61 : vector<32x256xi1>, vector<32x256xf32>
    %c0_16 = arith.constant 0 : index
    %c0_17 = arith.constant 0 : index
    %c0_18 = arith.constant 0 : index
    %63 = vector.load %arg2[%c0_16, %c0_17, %c0_18] : memref<3x1x32xf32, #tpu.memory_space<vmem>>, vector<1x1x32xf32>
    %64 = vector.shape_cast %63 : vector<1x1x32xf32> to vector<1x32xf32>
    %cst_19 = arith.constant dense<0.000000e+00> : vector<1x256xf32>
    %65 = tpu.matmul %64, %46, %cst_19 {dimension_numbers = #tpu.dot_dimension_numbers<[1], [0], [0], [1], [0, 0, 1, 1], [], []>} : vector<1x32xf32>, vector<32x256xf32>, vector<1x256xf32> -> vector<1x256xf32>
    %c1 = arith.constant 1 : index
    %c0_20 = arith.constant 0 : index
    %c0_21 = arith.constant 0 : index
    %66 = vector.load %arg2[%c1, %c0_20, %c0_21] : memref<3x1x32xf32, #tpu.memory_space<vmem>>, vector<1x1x32xf32>
    %67 = vector.shape_cast %66 : vector<1x1x32xf32> to vector<1x32xf32>
    %68 = vector.broadcast %26 : vector<32x1xf32> to vector<32x256xf32>
    %69 = arith.addf %28, %68 : vector<32x256xf32>
    %cst_22 = arith.constant dense<0.000000e+00> : vector<1x256xf32>
    %70 = tpu.matmul %67, %69, %cst_22 {dimension_numbers = #tpu.dot_dimension_numbers<[1], [0], [0], [1], [0, 0, 1, 1], [], []>} : vector<1x32xf32>, vector<32x256xf32>, vector<1x256xf32> -> vector<1x256xf32>
    %71 = arith.addf %65, %70 : vector<1x256xf32>
    %c2 = arith.constant 2 : index
    %c0_23 = arith.constant 0 : index
    %c0_24 = arith.constant 0 : index
    %72 = vector.load %arg2[%c2, %c0_23, %c0_24] : memref<3x1x32xf32, #tpu.memory_space<vmem>>, vector<1x1x32xf32>
    %73 = vector.shape_cast %72 : vector<1x1x32xf32> to vector<1x32xf32>
    %cst_25 = arith.constant dense<0.000000e+00> : vector<1x256xf32>
    %74 = tpu.matmul %73, %62, %cst_25 {dimension_numbers = #tpu.dot_dimension_numbers<[1], [0], [0], [1], [0, 0, 1, 1], [], []>} : vector<1x32xf32>, vector<32x256xf32>, vector<1x256xf32> -> vector<1x256xf32>
    %75 = arith.addf %71, %74 : vector<1x256xf32>
    %76 = vector.broadcast %27 : vector<1x1xf32> to vector<1x256xf32>
    %77 = arith.addf %75, %76 : vector<1x256xf32>
    %cst_26 = arith.constant 5.000000e-01 : f32
    %78 = vector.broadcast %cst_26 : f32 to vector<1x256xf32>
    %79 = arith.mulf %78, %77 : vector<1x256xf32>
    %80 = math.tanh %79 : vector<1x256xf32>
    %cst_27 = arith.constant 5.000000e-01 : f32
    %81 = vector.broadcast %cst_27 : f32 to vector<1x256xf32>
    %82 = arith.mulf %81, %80 : vector<1x256xf32>
    %cst_28 = arith.constant 5.000000e-01 : f32
    %83 = vector.broadcast %cst_28 : f32 to vector<1x256xf32>
    %84 = arith.addf %82, %83 : vector<1x256xf32>
    %c0_29 = arith.constant 0 : index
    %c0_30 = arith.constant 0 : index
    %85 = vector.load %arg6[%c0_29, %c0_30] : memref<1x256xf32, #tpu.memory_space<vmem>>, vector<1x256xf32>
    tpu.vector_store %arg6[%c0_29, %c0_30], %84 {strides = array<i32>} : memref<1x256xf32, #tpu.memory_space<vmem>>, vector<1x256xf32>,
    return
  }
  func.func @transform_0(%arg0: i32) -> (i32, i32) {
    %c0_i32 = arith.constant 0 : i32
    %c0_i32_0 = arith.constant 0 : i32
    %c0_i32_1 = arith.constant 0 : i32
    return %c0_i32, %c0_i32_0 : i32, i32
  }
  func.func @transform_1(%arg0: i32) -> (i32, i32, i32) {
    %c0_i32 = arith.constant 0 : i32
    %c0_i32_0 = arith.constant 0 : i32
    %c0_i32_1 = arith.constant 0 : i32
    %c0_i32_2 = arith.constant 0 : i32
    return %c0_i32, %c0_i32_0, %c0_i32_1 : i32, i32, i32
  }
  func.func @transform_2(%arg0: i32) -> (i32, i32) {
    %c0_i32 = arith.constant 0 : i32
    %c0_i32_0 = arith.constant 0 : i32
    return %c0_i32, %arg0 : i32, i32
  }
  func.func @transform_3(%arg0: i32) -> (i32, i32) {
    %c2_i32 = arith.constant 2 : i32
    %0 = arith.muli %arg0, %c2_i32 : i32
    %c1_i32 = arith.constant 1 : i32
    %1 = arith.subi %0, %c1_i32 : i32
    %c0_i32 = arith.constant 0 : i32
    %2 = arith.maxsi %1, %c0_i32 : i32
    %c0_i32_0 = arith.constant 0 : i32
    %c0_i32_1 = arith.constant 0 : i32
    return %c0_i32_0, %2 : i32, i32
  }
  func.func @transform_4(%arg0: i32) -> (i32, i32) {
    %c1_i32 = arith.constant 1 : i32
    %0 = arith.addi %arg0, %c1_i32 : i32
    %c2_i32 = arith.constant 2 : i32
    %1 = arith.muli %0, %c2_i32 : i32
    %c1_i32_0 = arith.constant 1 : i32
    %2 = arith.minsi %1, %c1_i32_0 : i32
    %c0_i32 = arith.constant 0 : i32
    %c0_i32_1 = arith.constant 0 : i32
    return %c0_i32, %2 : i32, i32
  }
  func.func @transform_5(%arg0: i32) -> (i32, i32) {
    %c0_i32 = arith.constant 0 : i32
    %c0_i32_0 = arith.constant 0 : i32
    return %c0_i32, %arg0 : i32, i32
  }
}

</mosaic_0001>

<bundles_post_ra>
// kernel: tcn2_forward.4
= control target key start
LH: loop header
LB: loop body
LE: loop exit
PB: predicated region body
PF: predicated region fallthrough
CT: control target
= control target key end

     0   :  { %v77_v0 = vlaneseq  ;;  %v705_v1 = vmov 1   ;;  %v706_v2 = vmov 4   ;;  %s707_s24 = smov 1   ;;  %v708_v11 = vmov 2   ;;  %s891_s0 = inlined_call_operand.vmem [shape: f32[32,8], index: 0, kind: input, shape index: {}]   ;;  %s892_s2 = inlined_call_operand.vmem [shape: f32[1,256], index: 2, kind: input, shape index: {}, may-alias: {1,2,3}]   ;;  %s893_s1 = inlined_call_operand.vmem [shape: f32[1,256], index: 1, kind: input, shape index: {}, may-alias: {1,2,3}]   ;;  %s894_s3 = inlined_call_operand.vmem [shape: f32[1,256], index: 3, kind: input, shape index: {}, may-alias: {1,2,3}]   ;;  %s895_s4 = inlined_call_operand.vmem [shape: f32[32,256], index: 4, kind: output, shape index: {0}]   ;;  %s896_s5 = inlined_call_operand.vmem [shape: f32[1,32,2], index: 5, kind: output, shape index: {1}]  }
   0x1   :  { %690 = vset.pattern.permute.xlu1 %v705_v1  ;;  %689 = vset.pattern.permute.xlu0 %v706_v2  ;;  %v747_v3 = vld [vmem:[%s891_s0] sm:$0xff]  ;;  %v709_v12 = vmov 1.0|1.0   ;;  %v115_v14 = vld [vmem:[%s891_s0 + $0x8] sm:$0xff]  ;;  %v711_v15 = vmov 0   ;;  %v116_v16 = vld [vmem:[%s891_s0 + $0x10] sm:$0xff] }
   0x2   :  { %208 = vperm.xlu1 %690, %v747_v3   ;;  %144 = vperm.xlu0 %689, %v747_v3   ;;  %v752_v4 = vshrl.u32 %v77_v0, 7  ;;  %v119_v5 = vld [vmem:[%s892_s2] sm:$0x1]  ;;  %v560_v13 = vld [vmem:[%s894_s3 + $0x1] sm:$0x1]  ;;  %v712_v17 = vmov 3  }
   0x3   :  { %v760_v6 = vld [vmem:[%s893_s1] sm:$0x3]  ;;  %649 = vmatprep.subr.bf16.mxu0 %v709_v12  ;;  %665 = vmatprep.subr.bf16.mxu1 %v709_v12  ;;  %s710_s1 = smov 127   ;;  %v117_v18 = vld [vmem:[%s891_s0 + $0x18] sm:$0xff]  ;;  %v78_v21 = vand.u32 127, %v77_v0  ;;  %vm536_vm6 = vcmask 7168  }
   0x4   :  { %v763_v7 = vsub.s32 0, %v752_v4  ;;  %v128_v8 = vsub.s32 1, %v752_v4  ;;  %650 = vmatpush3.bf16.msra.mxu0 %v709_v12  ;;  %666 = vmatpush3.bf16.msra.mxu1 %v709_v12  ;;  %vm541_vm7 = vcmask 15360  }
   0x5   :  { %651 = vmatprep.subr.bf16.mxu0 %v709_v12  ;;  %667 = vmatprep.subr.bf16.mxu1 %v709_v12  ;;  %vm136_vm0 = vcmp.lt.s32.totalorder %v78_v21, 1  ;;  %v79_v24 = vadd.s32 128, %v78_v21  ;;  %vm110_vm1 = vcmp.lt.s32.totalorder %v78_v21, 127  ;;  %vm160_vm2 = vcmp.ge.s32.totalorder %v78_v21, 127 }
   0x6   :  { %139 = vrot.lane.b32.xlu0 %v119_v5, %s707_s24  ;;  %v125_v9 = vrot.slane %v760_v6, %v763_v7  ;;  %v129_v10 = vrot.slane %v760_v6, %v128_v8  ;;  %691 = vset.pattern.permute.xlu1 %v708_v11  ;;  %vm108_vm3 = vcmp.ge.s32.totalorder %v78_v21, 1 }
   0x7   :  { %693 = vset.pattern.permute.xlu0 %v705_v1  ;;  %v95_v28 = vand.u32 127, %v79_v24 }
   0x8   :  { %132 = vrot.lane.b32.xlu1 %v125_v9, %s707_s24  ;;  %652 = vmatpush3.bf16.msra.mxu0 %v709_v12 }
   0x9   :  { %653 = vmatprep.subr.bf16.mxu0 %v709_v12  ;;  %668 = vmatpush3.bf16.msra.mxu1 %v709_v12  ;;  %vm109_vm4 = vcmp.ge.s32.totalorder %v95_v28, 1  ;;  %vm801_vm5 = vcmp.lt.s32.totalorder %v95_v28, 127 }
   0xa   :  { %153 = vrot.lane.b32.xlu0 %v129_v10, %s710_s1  ;;  %669 = vmatprep.subr.bf16.mxu1 %v709_v12 }
   0xc   :  { %134 = vrot.lane.b32.xlu1 %v129_v10, %s707_s24  ;;  %654 = vmatpush3.bf16.msra.mxu0 %v709_v12 }
   0xd   :  { %655 = vmatprep.subr.bf16.mxu0 %v709_v12  ;;  %670 = vmatpush3.bf16.msra.mxu1 %v709_v12 }
   0xe   :  { %158 = vrot.lane.b32.xlu0 %v560_v13, %s710_s1  ;;  %671 = vmatprep.subr.bf16.mxu1 %v709_v12 }
  0x10   :  { %151 = vrot.lane.b32.xlu1 %v125_v9, %s710_s1  ;;  %656 = vmatpush3.bf16.msra.mxu0 %v709_v12 }
  0x11   :  { %657 = vmatprep.subr.bf16.mxu0 %v709_v12  ;;  %672 = vmatpush3.bf16.msra.mxu1 %v709_v12 }
  0x12   :  { %212 = vperm.xlu0 %693, %v115_v14   ;;  %673 = vmatprep.subr.bf16.mxu1 %v709_v12 }
  0x14   :  { %251 = vperm.xlu1 %691, %v747_v3   ;;  %658 = vmatpush3.bf16.msra.mxu0 %v709_v12 }
  0x15   :  { %659 = vmatprep.subr.bf16.mxu0 %v709_v12  ;;  %674 = vmatpush3.bf16.msra.mxu1 %v709_v12 }
  0x16   :  { %694 = vset.pattern.permute.xlu0 %v711_v15  ;;  %675 = vmatprep.subr.bf16.mxu1 %v709_v12 }
  0x17   :  { %173 = vperm.xlu0 %694, %v747_v3  }
  0x18   :  { %692 = vset.pattern.permute.xlu1 %v711_v15  ;;  %660 = vmatpush3.bf16.msra.mxu0 %v709_v12 }
  0x19   :  { %178 = vperm.xlu1 %692, %v115_v14   ;;  %661 = vmatprep.subr.bf16.mxu0 %v709_v12 }
  0x1a   :  { %676 = vmatpush3.bf16.msra.mxu1 %v709_v12 }
  0x1b   :  { %183 = vperm.xlu0 %694, %v116_v16   ;;  %677 = vmatprep.subr.bf16.mxu1 %v709_v12 }
  0x1c   :  { %662 = vmatpush3.bf16.msra.mxu0 %v709_v12 }
  0x1d   :  { %695 = vset.pattern.permute.xlu1 %v708_v11  ;;  %663 = vmatprep.subr.bf16.mxu0 %v709_v12 }
  0x1e   :  { %255 = vperm.xlu1 %695, %v115_v14   ;;  %678 = vmatpush3.bf16.msra.mxu1 %v709_v12 }
  0x1f   :  { %699 = vset.pattern.permute.xlu0 %v712_v17  ;;  %679 = vmatprep.subr.bf16.mxu1 %v709_v12 }
  0x20   :  { %295 = vperm.xlu0 %699, %v115_v14   ;;  %664 = vmatpush3.bf16.msra.mxu0 %v709_v12 }
  0x22   :  { %696 = vset.pattern.permute.xlu1 %v712_v17  ;;  %680 = vmatpush3.bf16.msra.mxu1 %v709_v12 }
  0x23   :  { %291 = vperm.xlu1 %696, %v747_v3  }
  0x24   :  { %702 = vset.pattern.permute.xlu0 %v708_v11 }
  0x25   :  { %263 = vperm.xlu0 %702, %v117_v18  }
  0x27   :  { %697 = vset.pattern.permute.xlu1 %v705_v1 }
  0x28   :  { %216 = vperm.xlu1 %697, %v116_v16  }
  0x29   :  { %704 = vset.pattern.permute.xlu0 %v712_v17 }
  0x2c   :  { %698 = vset.pattern.permute.xlu1 %v708_v11 }
  0x2d   :  { %259 = vperm.xlu1 %698, %v116_v16  }
  0x31   :  { %700 = vset.pattern.permute.xlu1 %v711_v15 }
  0x32   :  { %188 = vperm.xlu1 %700, %v117_v18  }
  0x36   :  { %701 = vset.pattern.permute.xlu1 %v705_v1 }
  0x37   :  { %220 = vperm.xlu1 %701, %v117_v18  }
  0x3b   :  { %703 = vset.pattern.permute.xlu1 %v712_v17 }
  0x3c   :  { %299 = vperm.xlu1 %703, %v116_v16  }
  0x40   :  { %303 = vperm.xlu1 %703, %v117_v18  }
  0x81   :  { %v209_v19 = vpop.permute.xlu1 %208  ;;  %v145_v20 = vpop.permute.xlu0 %144 }
  0x82   :  { %v169_v34 = vrot.slane %v145_v20, %v763_v7 }
  0x84   :  { %v171_v40 = vadd.f32 %v169_v34, %v760_v6 }
  0x85   :  { %v133_v22 = vpop.permute.xlu1 %132  ;;  %v140_v23 = vpop.permute.xlu0 %139 }
  0x86   :  { %v812_v50 = vrot.slane %v171_v40, %v763_v7  ;;  %v816_v51 = vrot.slane %v171_v40, %v128_v8 }
  0x88   :  { %v234_v63 = vmul.f32 %v812_v50, %v209_v19  ;;  %v235_v0 = vmul.f32 %v816_v51, %v209_v19 }
  0x89   :  { %v135_v25 = vpop.permute.xlu1 %134  ;;  %v154_v26 = vpop.permute.xlu0 %153 }
  0x8a   :  { %v138_v27 = vsel %vm136_vm0, %v135_v25, %v133_v22  ;;  %v137_v29 = vsel %vm136_vm0, %v133_v22, %v135_v25 }
  0x8b   :  { %v141_v30 = vsel %vm136_vm0, %v140_v23, %v138_v27  ;;  %v148_v36 = vadd.f32 %v145_v20, %v137_v29 }
  0x8c   :  { %v147_v35 = vadd.f32 %v145_v20, %v141_v30 }
  0x8d   :  { %v152_v31 = vpop.permute.xlu1 %151  ;;  %v159_v32 = vpop.permute.xlu0 %158  ;;  %v150_v43 = vsel %vm109_vm4, %v148_v36, 0.0 }
  0x8e   :  { %v157_v33 = vsel %vm110_vm1, %v154_v26, %v152_v31  ;;  %v156_v37 = vsel %vm110_vm1, %v152_v31, %v154_v26  ;;  %v149_v42 = vsel %vm108_vm3, %v147_v35, 0.0  ;;  %v809_v49 = vrot.slane %v150_v43, %v763_v7 }
  0x8f   :  { %v161_v38 = vsel %vm160_vm2, %v159_v32, %v157_v33  ;;  %v162_v44 = vadd.f32 %v156_v37, %v145_v20  ;;  %v806_v48 = vrot.slane %v149_v42, %v763_v7 }
  0x90   :  { %v163_v45 = vadd.f32 %v161_v38, %v145_v20 }
  0x91   :  { %v213_v39 = vpop.permute.xlu0 %212  ;;  %v164_v52 = vsel %vm110_vm1, %v162_v44, 0.0 }
  0x92   :  { %v165_v53 = vsel %vm801_vm5, %v163_v45, 0.0  ;;  %v236_v57 = vmul.f32 %v812_v50, %v213_v39  ;;  %v237_v58 = vmul.f32 %v816_v51, %v213_v39  ;;  %v828_v61 = vrot.slane %v164_v52, %v763_v7 }
  0x93   :  { %v252_v41 = vpop.permute.xlu1 %251  ;;  %v831_v62 = vrot.slane %v165_v53, %v763_v7 }
  0x94   :  { %v274_v10 = vmul.f32 %v828_v61, %v252_v41 }
  0x95   :  { %v275_v11 = vmul.f32 %v831_v62, %v252_v41 }
  0x96   :  { %v174_v47 = vpop.permute.xlu0 %173 }
  0x97   :  { %v199_v55 = vmul.f32 %v806_v48, %v174_v47  ;;  %v200_v56 = vmul.f32 %v809_v49, %v174_v47 }
  0x98   :  { %v179_v54 = vpop.permute.xlu1 %178 }
  0x99   :  { %v201_v59 = vmul.f32 %v806_v48, %v179_v54  ;;  %v202_v60 = vmul.f32 %v809_v49, %v179_v54  ;;  %v242_v2 = vadd.f32 %v234_v63, %v199_v55  ;;  %v243_v3 = vadd.f32 %v235_v0, %v200_v56 }
  0x9a   :  { %v184_v1 = vpop.permute.xlu0 %183 }
  0x9b   :  { %v244_v5 = vadd.f32 %v236_v57, %v201_v59  ;;  %v245_v6 = vadd.f32 %v237_v58, %v202_v60  ;;  %v282_v14 = vadd.f32 %v274_v10, %v242_v2  ;;  %v283_v15 = vadd.f32 %v275_v11, %v243_v3 }
  0x9c   :  { %v203_v34 = vmul.f32 %v806_v48, %v184_v1  ;;  %v204_v35 = vmul.f32 %v809_v49, %v184_v1 }
  0x9d   :  { %v256_v4 = vpop.permute.xlu1 %255 }
  0x9e   :  { %v276_v8 = vmul.f32 %v828_v61, %v256_v4  ;;  %v277_v9 = vmul.f32 %v831_v62, %v256_v4 }
  0x9f   :  { %v296_v7 = vpop.permute.xlu0 %295 }
  0xa0   :  { %v284_v12 = vadd.f32 %v276_v8, %v244_v5  ;;  %v285_v13 = vadd.f32 %v277_v9, %v245_v6 }
  0xa2   :  { %v308_v16 = vadd.f32 %v296_v7, %v284_v12  ;;  %v309_v17 = vadd.f32 %v296_v7, %v285_v13  ;;  %v292_v18 = vpop.permute.xlu1 %291 }
  0xa3   :  { %v306_v19 = vadd.f32 %v292_v18, %v282_v14  ;;  %v307_v20 = vadd.f32 %v292_v18, %v283_v15 }
  0xa4   :  { %v316_v21 = vmax.f32 %v308_v16, 0.0  ;;  %v317_v22 = vmax.f32 %v309_v17, 0.0  ;;  %v264_v45 = vpop.permute.xlu0 %263 }
  0xa5   :  { %v314_v23 = vmax.f32 %v306_v19, 0.0  ;;  %v315_v24 = vmax.f32 %v307_v20, 0.0  ;;  %v280_v55 = vmul.f32 %v828_v61, %v264_v45  ;;  %v281_v56 = vmul.f32 %v831_v62, %v264_v45 }
  0xa6   :  { %336 = vst [vmem:[%s895_s4 + $0x10] sm:$0xff] %v316_v21  ;;  %337 = vst [vmem:[%s895_s4 + $0x18] sm:$0xff] %v317_v22  ;;  %v430_v28 = vmul.f32 %v317_v22, %v317_v22  ;;  %v429_v30 = vmul.f32 %v316_v21, %v316_v21 }
  0xa7   :  { %334 = vst [vmem:[%s895_s4] sm:$0xff] %v314_v23  ;;  %335 = vst [vmem:[%s895_s4 + $0x8] sm:$0xff] %v315_v24  ;;  %v217_v25 = vpop.permute.xlu1 %216  ;;  %406 = vmatprep.mubr.f32.mxu0 %v315_v24  ;;  %v428_v26 = vmul.f32 %v315_v24, %v315_v24  ;;  %v427_v27 = vmul.f32 %v314_v23, %v314_v23 }
  0xa8   :  { %407 = vmatmul.mubr.f32.vlgmr.msra.gmra.mrb[0].mxu0 %v314_v23  ;;  %v238_v32 = vmul.f32 %v812_v50, %v217_v25  ;;  %v239_v33 = vmul.f32 %v816_v51, %v217_v25 }
  0xa9   :  { %411 = vmatprep.mubr.f32.mxu0 %v317_v22  ;;  %499 = vmatprep.mubr.f32.mxu1 %v428_v26 }
  0xaa   :  { %500 = vmatmul.mubr.f32.vlgmr.msra.gmra.mrb[0].mxu1 %v427_v27  ;;  %v246_v41 = vadd.f32 %v238_v32, %v203_v34  ;;  %v247_v42 = vadd.f32 %v239_v33, %v204_v35 }
  0xab   :  { %504 = vmatprep.mubr.f32.mxu1 %v430_v28 }
  0xac   :  { %v260_v29 = vpop.permute.xlu1 %259  ;;  %412 = vmatmul.mubr.f32.gmra.mrb[2].mxu0 %v316_v21 }
  0xad   :  { %v278_v36 = vmul.f32 %v828_v61, %v260_v29  ;;  %v279_v37 = vmul.f32 %v831_v62, %v260_v29 }
  0xae   :  { %505 = vmatmul.mubr.f32.gmra.mrb[2].mxu1 %v429_v30 }
  0xaf   :  { %v286_v52 = vadd.f32 %v278_v36, %v246_v41  ;;  %v287_v53 = vadd.f32 %v279_v37, %v247_v42 }
  0xb1   :  { %v189_v31 = vpop.permute.xlu1 %188 }
  0xb2   :  { %v205_v43 = vmul.f32 %v806_v48, %v189_v31  ;;  %v206_v44 = vmul.f32 %v809_v49, %v189_v31 }
  0xb6   :  { %v221_v38 = vpop.permute.xlu1 %220 }
  0xb7   :  { %v240_v39 = vmul.f32 %v812_v50, %v221_v38  ;;  %v241_v40 = vmul.f32 %v816_v51, %v221_v38 }
  0xb9   :  { %v248_v46 = vadd.f32 %v240_v39, %v205_v43  ;;  %v249_v47 = vadd.f32 %v241_v40, %v206_v44 }
  0xbb   :  { %v300_v54 = vpop.permute.xlu1 %299  ;;  %v288_v59 = vadd.f32 %v280_v55, %v248_v46  ;;  %v289_v60 = vadd.f32 %v281_v56, %v249_v47 }
  0xbc   :  { %v310_v57 = vadd.f32 %v300_v54, %v286_v52  ;;  %v311_v50 = vadd.f32 %v300_v54, %v287_v53 }
  0xbe   :  { %v318_v58 = vmax.f32 %v310_v57, 0.0  ;;  %v319_v51 = vmax.f32 %v311_v50, 0.0 }
  0xbf   :  { %v304_v63 = vpop.permute.xlu1 %303 }
  0xc0   :  { %338 = vst [vmem:[%s895_s4 + $0x20] sm:$0xff] %v318_v58  ;;  %339 = vst [vmem:[%s895_s4 + $0x28] sm:$0xff] %v319_v51  ;;  %v312_v48 = vadd.f32 %v304_v63, %v288_v59  ;;  %v313_v49 = vadd.f32 %v304_v63, %v289_v60  ;;  %416 = vmatprep.mubr.f32.mxu0 %v319_v51  ;;  %v432_v61 = vmul.f32 %v319_v51, %v319_v51 }
  0xc1   :  { %v431_v62 = vmul.f32 %v318_v58, %v318_v58  ;;  %417 = vmatmul.mubr.f32.gmra.mrb[4].mxu0 %v318_v58 }
  0xc2   :  { %v320_v0 = vmax.f32 %v312_v48, 0.0  ;;  %v321_v1 = vmax.f32 %v313_v49, 0.0  ;;  %509 = vmatprep.mubr.f32.mxu1 %v432_v61 }
  0xc3   :  { %510 = vmatmul.mubr.f32.gmra.mrb[4].mxu1 %v431_v62 }
  0xc4   :  { %340 = vst [vmem:[%s895_s4 + $0x30] sm:$0xff] %v320_v0  ;;  %341 = vst [vmem:[%s895_s4 + $0x38] sm:$0xff] %v321_v1  ;;  %421 = vmatprep.mubr.f32.mxu0 %v321_v1  ;;  %v434_v2 = vmul.f32 %v321_v1, %v321_v1  ;;  %v433_v3 = vmul.f32 %v320_v0, %v320_v0 }
  0xc5   :  { %422 = vmatmul.mubr.f32.gmra.mrb[6].mxu0 %v320_v0 }
  0xc6   :  { %514 = vmatprep.mubr.f32.mxu1 %v434_v2 }
  0xc7   :  { %515 = vmatmul.mubr.f32.gmra.mrb[6].mxu1 %v433_v3 }
 0x17b   :  { %v593_v4 = vpop.f32.mrb[0].mxu0 }
 0x17c   :  { %v594_v5 = vpop.f32.mrb[1].mxu0 }
 0x17d   :  { %v595_v6 = vadd.f32 %v594_v5, %v593_v4  ;;  %v637_v8 = vpop.f32.mrb[0].mxu1 }
 0x17e   :  { %v638_v9 = vpop.f32.mrb[1].mxu1 }
 0x17f   :  { %v639_v10 = vadd.f32 %v638_v9, %v637_v8  ;;  %v596_v11 = vpop.f32.mrb[2].mxu0 }
 0x180   :  { %v597_v7 = vpop.f32.mrb[3].mxu0 }
 0x181   :  { %v598_v12 = vadd.f32 %v597_v7, %v596_v11  ;;  %524 = vrot.lane.b32.xlu0 %v639_v10, %s707_s24  ;;  %v640_v13 = vpop.f32.mrb[2].mxu1 }
 0x182   :  { %v641_v14 = vpop.f32.mrb[3].mxu1 }
 0x183   :  { %v642_v15 = vadd.f32 %v641_v14, %v640_v13 }
 0x185   :  { %526 = vrot.lane.b32.xlu1 %v642_v15, %s707_s24 }
 0x194   :  { %v599_v16 = vpop.f32.mrb[4].mxu0 }
 0x195   :  { %v600_v17 = vpop.f32.mrb[5].mxu0 }
 0x196   :  { %v601_v18 = vadd.f32 %v600_v17, %v599_v16  ;;  %v643_v19 = vpop.f32.mrb[4].mxu1 }
 0x197   :  { %v644_v20 = vpop.f32.mrb[5].mxu1 }
 0x198   :  { %v645_v21 = vadd.f32 %v644_v20, %v643_v19  ;;  %v602_v22 = vpop.f32.mrb[6].mxu0 }
 0x199   :  { %v603_v23 = vpop.f32.mrb[7].mxu0 }
 0x19a   :  { %v604_v24 = vadd.f32 %v603_v23, %v602_v22  ;;  %528 = vrot.lane.b32.xlu0 %v645_v21, %s707_s24  ;;  %v646_v25 = vpop.f32.mrb[6].mxu1 }
 0x19b   :  { %v647_v26 = vpop.f32.mrb[7].mxu1 }
 0x19c   :  { %v648_v27 = vadd.f32 %v647_v26, %v646_v25 }
 0x19e   :  { %530 = vrot.lane.b32.xlu1 %v648_v27, %s707_s24 }
 0x1f3   :  { %v525_v28 = vpop.permute.xlu0 %524 }
 0x1f4   :  { %v537_v29 = vsel %vm536_vm6, %v595_v6, %v525_v28 }
 0x1f5   :  { %542 = vst.msk [vmem:[%s896_s5] sm:$0xff] %vm541_vm7, %v537_v29 }
 0x1f7   :  { %v527_v30 = vpop.permute.xlu1 %526 }
 0x1f8   :  { %v538_v31 = vsel %vm536_vm6, %v598_v12, %v527_v30 }
 0x1f9   :  { %543 = vst.msk [vmem:[%s896_s5 + $0x8] sm:$0xff] %vm541_vm7, %v538_v31 }
 0x20c   :  { %v529_v32 = vpop.permute.xlu0 %528 }
 0x20d   :  { %v539_v33 = vsel %vm536_vm6, %v601_v18, %v529_v32 }
 0x20e   :  { %544 = vst.msk [vmem:[%s896_s5 + $0x10] sm:$0xff] %vm541_vm7, %v539_v33 }
 0x210   :  { %v531_v34 = vpop.permute.xlu1 %530 }
 0x211   :  { %v540_v35 = vsel %vm536_vm6, %v604_v24, %v531_v34 }
 0x212   :  { %545 = vst.msk [vmem:[%s896_s5 + $0x18] sm:$0xff] %vm541_vm7, %v540_v35 }

// kernel: tcn2_forward.5
= control target key start
LH: loop header
LB: loop body
LE: loop exit
PB: predicated region body
PF: predicated region fallthrough
CT: control target
= control target key end

     0   :  { %v1175_v2 = vmov 0   ;;  %s1176_s9 = smov 2   ;;  %v1177_v15 = vmov 0.0   ;;  %s1178_s29 = smov 126   ;;  %v1179_v22 = vmov 1   ;;  %v134_v24 = vlaneseq  ;;  %s1612_s0 = inlined_call_operand.vmem [shape: f32[32,2], index: 0, kind: input, shape index: {}]   ;;  %s1613_s1 = inlined_call_operand.vmem [shape: f32[3,32,32], index: 1, kind: input, shape index: {}]   ;;  %s1614_s2 = inlined_call_operand.vmem [shape: f32[32,256], index: 2, kind: input, shape index: {}, may-alias: {2,3,4}]   ;;  %s1615_s3 = inlined_call_operand.vmem [shape: f32[32,256], index: 3, kind: input, shape index: {}, may-alias: {2,3,4}]   ;;  %s1616_s4 = inlined_call_operand.vmem [shape: f32[32,256], index: 4, kind: input, shape index: {}, may-alias: {2,3,4}]   ;;  %s1617_s5 = inlined_call_operand.vmem [shape: f32[32,256], index: 5, kind: output, shape index: {0}]   ;;  %s1618_s6 = inlined_call_operand.vmem [shape: f32[1,32,2], index: 6, kind: output, shape index: {1}]  }
   0x1   :  { %v1220_v0 = vld [vmem:[%s1612_s0 + $0x10] sm:$0xff]  ;;  %v171_v1 = vld [vmem:[%s1612_s0] sm:$0xff]  ;;  %1172 = vset.pattern.permute.xlu1 %v1175_v2  ;;  %1171 = vset.pattern.permute.xlu0 %v1175_v2  ;;  %v174_v3 = vld [vmem:[%s1612_s0 + $0x18] sm:$0xff]  ;;  %v1180_v23 = vmov 1.0|1.0   ;;  %vm347_vm2 = vcmask 261120  }
   0x2   :  { %242 = vperm.xlu1 %1172, %v1220_v0   ;;  %232 = vperm.xlu0 %1171, %v171_v1   ;;  %v172_v4 = vld [vmem:[%s1612_s0 + $0x8] sm:$0xff]  ;;  %v1235_v5 = vld [vmem:[%s1614_s2 + $0x10] sm:$0xff]  ;;  %v1240_v6 = vld [vmem:[%s1614_s2] sm:$0xff]  ;;  %v1335_v27 = vand.u32 127, %v134_v24  ;;  %vm910_vm11 = vcmask 7168   ;;  %vm915_vm12 = vcmask 15360  }
   0x3   :  { %v1247_v7 = vld [vmem:[%s1614_s2 + $0x18] sm:$0xff]  ;;  %v1252_v8 = vld [vmem:[%s1614_s2 + $0x8] sm:$0xff]  ;;  %v61_v9 = vld [vmem:[%s1615_s3 + $0x10] sm:$0xff]  ;;  %424 = vmatprep.mubr.f32.mxu0 %v1177_v15  ;;  %1100 = vmatprep.subr.bf16.mxu1 %v1180_v23 }
   0x4   :  { %v59_v10 = vld [vmem:[%s1615_s3] sm:$0xff]  ;;  %v1265_v11 = vld [vmem:[%s1614_s2 + $0x30] sm:$0xff]  ;;  %v1277_v13 = vld [vmem:[%s1614_s2 + $0x38] sm:$0xff]  ;;  %1101 = vmatpush3.bf16.msra.mxu1 %v1180_v23  ;;  %v1344_v31 = vadd.s32 128, %v1335_v27  ;;  %vm207_vm0 = vcmp.lt.s32.totalorder %v1335_v27, 2  ;;  %vm165_vm4 = vcmp.ge.s32.totalorder %v1335_v27, 2 }
   0x5   :  { %v1270_v12 = vld [vmem:[%s1614_s2 + $0x20] sm:$0xff]  ;;  %v1282_v14 = vld [vmem:[%s1614_s2 + $0x28] sm:$0xff]  ;;  %v65_v16 = vld [vmem:[%s1615_s3 + $0x30] sm:$0xff]  ;;  %1102 = vmatprep.subr.bf16.mxu1 %v1180_v23  ;;  %vm167_vm6 = vcmp.lt.s32.totalorder %v1335_v27, 126  ;;  %vm303_vm7 = vcmp.ge.s32.totalorder %v1335_v27, 126 }
   0x6   :  { %247 = vperm.xlu1 %1172, %v174_v3   ;;  %237 = vperm.xlu0 %1171, %v172_v4   ;;  %v63_v17 = vld [vmem:[%s1615_s3 + $0x20] sm:$0xff]  ;;  %v941_v18 = vld [vmem:[%s1616_s4 + $0x18] sm:$0xff]  ;;  %v940_v19 = vld [vmem:[%s1616_s4 + $0x8] sm:$0xff]  ;;  %v152_v42 = vand.u32 127, %v1344_v31 }
   0x7   :  { %v943_v20 = vld [vmem:[%s1616_s4 + $0x38] sm:$0xff]  ;;  %v942_v21 = vld [vmem:[%s1616_s4 + $0x28] sm:$0xff]  ;;  %v944_v53 = vld [vmem:[%s1613_s1 + $0x20] sm:$0xff] }
   0x8   :  { %1103 = vmatpush3.bf16.msra.mxu1 %v1180_v23  ;;  %vm1364_vm1 = vcmp.ge.s32.totalorder %v152_v42, 2  ;;  %v945_v63 = vld [vmem:[%s1613_s1 + $0x28] sm:$0xff]  ;;  %vm1401_vm5 = vmpackc.low %vm165_vm4, %vm165_vm4  ;;  %vm1462_vm8 = vcmp.lt.s32.totalorder %v152_v42, 126  ;;  %v332_v42 = vld [vmem:[%s1613_s1 + $0x10] sm:$0xff] }
   0x9   :  { %1104 = vmatprep.subr.bf16.mxu1 %v1180_v23  ;;  %vm1077_vm3 = vmpackc.low %vm1364_vm1, %vm1364_vm1  ;;  %v964_v27 = vld [vmem:[%s1613_s1 + $0x40] sm:$0xff] }
   0xa   :  { %193 = vrot.lane.b32.xlu1 %v1235_v5, %s1176_s9  ;;  %191 = vrot.lane.b32.xlu0 %v1240_v6, %s1176_s9  ;;  %vm1089_vm9 = vmpackc.low %vm1462_vm8, %vm1462_vm8 }
   0xb   :  { %1173 = vset.pattern.permute.xlu0 %v1179_v22  ;;  %1174 = vset.pattern.permute.xlu1 %v1179_v22  ;;  %vm1485_vm10 = vmpackc.low %vm167_vm6, %vm167_vm6 }
   0xc   :  { %1105 = vmatpush3.bf16.msra.mxu1 %v1180_v23 }
   0xd   :  { %1106 = vmatprep.subr.bf16.mxu1 %v1180_v23 }
   0xe   :  { %201 = vrot.lane.b32.xlu1 %v1247_v7, %s1176_s9  ;;  %199 = vrot.lane.b32.xlu0 %v1252_v8, %s1176_s9 }
  0x10   :  { %1107 = vmatpush3.bf16.msra.mxu1 %v1180_v23 }
  0x11   :  { %1108 = vmatprep.subr.bf16.mxu1 %v1180_v23 }
  0x12   :  { %218 = vrot.lane.b32.xlu1 %v61_v9, %s1176_s9  ;;  %216 = vrot.lane.b32.xlu0 %v59_v10, %s1176_s9 }
  0x14   :  { %1109 = vmatpush3.bf16.msra.mxu1 %v1180_v23 }
  0x15   :  { %1110 = vmatprep.subr.bf16.mxu1 %v1180_v23 }
  0x16   :  { %197 = vrot.lane.b32.xlu1 %v1265_v11, %s1176_s9  ;;  %195 = vrot.lane.b32.xlu0 %v1270_v12, %s1176_s9 }
  0x18   :  { %1111 = vmatpush3.bf16.msra.mxu1 %v1180_v23 }
  0x19   :  { %1112 = vmatprep.subr.bf16.mxu1 %v1180_v23 }
  0x1a   :  { %205 = vrot.lane.b32.xlu1 %v1277_v13, %s1176_s9  ;;  %203 = vrot.lane.b32.xlu0 %v1282_v14, %s1176_s9 }
  0x1c   :  { %1113 = vmatpush3.bf16.msra.mxu1 %v1180_v23 }
  0x1d   :  { %1114 = vmatprep.subr.bf16.mxu1 %v1180_v23 }
  0x1e   :  { %222 = vrot.lane.b32.xlu1 %v65_v16, %s1176_s9  ;;  %220 = vrot.lane.b32.xlu0 %v63_v17, %s1176_s9 }
  0x20   :  { %1115 = vmatpush3.bf16.msra.mxu1 %v1180_v23 }
  0x21   :  { %1132 = vmatprep.subr.bf16.mxu1 %v1180_v23 }
  0x22   :  { %272 = vrot.lane.b32.xlu1 %v1235_v5, %s1178_s29  ;;  %270 = vrot.lane.b32.xlu0 %v1240_v6, %s1178_s29 }
  0x26   :  { %280 = vrot.lane.b32.xlu1 %v1247_v7, %s1178_s29  ;;  %278 = vrot.lane.b32.xlu0 %v1252_v8, %s1178_s29 }
  0x2a   :  { %297 = vrot.lane.b32.xlu1 %v941_v18, %s1178_s29  ;;  %295 = vrot.lane.b32.xlu0 %v940_v19, %s1178_s29 }
  0x2e   :  { %276 = vrot.lane.b32.xlu1 %v1265_v11, %s1178_s29  ;;  %274 = vrot.lane.b32.xlu0 %v1270_v12, %s1178_s29 }
  0x32   :  { %284 = vrot.lane.b32.xlu1 %v1277_v13, %s1178_s29  ;;  %282 = vrot.lane.b32.xlu0 %v1282_v14, %s1178_s29 }
  0x36   :  { %301 = vrot.lane.b32.xlu1 %v943_v20, %s1178_s29  ;;  %299 = vrot.lane.b32.xlu0 %v942_v21, %s1178_s29 }
  0x3a   :  { %665 = vperm.xlu0 %1173, %v171_v1   ;;  %669 = vperm.xlu1 %1174, %v172_v4   ;;  %v946_v4 = vld [vmem:[%s1613_s1 + $0x30] sm:$0xff] }
  0x3e   :  { %677 = vperm.xlu0 %1173, %v174_v3   ;;  %673 = vperm.xlu1 %1174, %v1220_v0  }
  0x81   :  { %v1331_v25 = vpop.permute.xlu1 %242  ;;  %v1333_v26 = vpop.permute.xlu0 %232 }
  0x82   :  { %v340_v30 = vadd.f32 %v1333_v26, %v1252_v8  ;;  %v339_v33 = vadd.f32 %v1333_v26, %v1240_v6  ;;  %v344_v38 = vadd.f32 %v1331_v25, %v1282_v14  ;;  %v343_v44 = vadd.f32 %v1331_v25, %v1270_v12 }
  0x85   :  { %v1337_v28 = vpop.permute.xlu1 %247  ;;  %v1339_v29 = vpop.permute.xlu0 %237 }
  0x86   :  { %v342_v32 = vadd.f32 %v1339_v29, %v1247_v7  ;;  %v341_v34 = vadd.f32 %v1339_v29, %v1235_v5  ;;  %v346_v35 = vadd.f32 %v1337_v28, %v1277_v13  ;;  %v345_v41 = vadd.f32 %v1337_v28, %v1265_v11  ;;  %v947_v11 = vld [vmem:[%s1613_s1 + $0x38] sm:$0xff] }
  0x88   :  { %v1068_v36 = vpack.c.bf16 %v342_v32, %v340_v30  ;;  %v1070_v37 = vpack.c.bf16 %v341_v34, %v339_v33  ;;  %v1072_v43 = vpack.c.bf16 %v346_v35, %v344_v38  ;;  %v1074_v47 = vpack.c.bf16 %v345_v41, %v343_v44  ;;  %v330_v32 = vld [vmem:[%s1613_s1] sm:$0xff] }
  0x89   :  { %v194_v39 = vpop.permute.xlu1 %193  ;;  %v192_v40 = vpop.permute.xlu0 %191 }
  0x8a   :  { %1069 = vmatprep.subr.bf16.mxu0 %v1068_v36 }
  0x8b   :  { %1071 = vmatpush1.bf16.msra.mxu0 %v1070_v37  ;;  %v331_v37 = vld [vmem:[%s1613_s1 + $0x8] sm:$0xff] }
  0x8c   :  { %1073 = vmatprep.subr.bf16.mxu0 %v1072_v43 }
  0x8d   :  { %v202_v45 = vpop.permute.xlu1 %201  ;;  %v200_v46 = vpop.permute.xlu0 %199 }
  0x8e   :  { %v209_v49 = vsel %vm207_vm0, %v194_v39, %v202_v45  ;;  %v208_v50 = vsel %vm207_vm0, %v192_v40, %v200_v46  ;;  %v213_v54 = vsel %vm207_vm0, %v202_v45, %v194_v39  ;;  %v212_v55 = vsel %vm207_vm0, %v200_v46, %v192_v40 }
  0x8f   :  { %v253_v51 = vadd.f32 %v1339_v29, %v209_v49  ;;  %v251_v52 = vadd.f32 %v1333_v26, %v208_v50  ;;  %1075 = vmatpush1.bf16.msra.mxu0 %v1074_v47 }
  0x91   :  { %v1076_v56 = vpack.c.bf16 %v253_v51, %v251_v52  ;;  %v219_v57 = vpop.permute.xlu1 %218  ;;  %v217_v58 = vpop.permute.xlu0 %216  ;;  %v333_v52 = vld [vmem:[%s1613_s1 + $0x18] sm:$0xff] }
  0x92   :  { %v227_v59 = vsel %vm207_vm0, %v219_v57, %v213_v54  ;;  %v226_v60 = vsel %vm207_vm0, %v217_v58, %v212_v55  ;;  %948 = vmatmul.mubr.msk.f32.vlgmr.msra.gmra.mrb[0].mxu0 %vm347_vm2, %v944_v53 }
  0x93   :  { %v252_v61 = vadd.f32 %v1339_v29, %v227_v59  ;;  %v250_v62 = vadd.f32 %v1333_v26, %v226_v60  ;;  %1078 = vmatprep.subr.msk.bf16.mxu0 %vm1077_vm3, %v1076_v56  ;;  %430 = vmatprep.mubr.f32.mxu0 %v1177_v15 }
  0x95   :  { %v1079_v1 = vpack.c.bf16 %v252_v61, %v250_v62  ;;  %v198_v2 = vpop.permute.xlu1 %197  ;;  %v196_v3 = vpop.permute.xlu0 %195 }
  0x96   :  { %949 = vmatmul.mubr.msk.f32.gmra.mrb[2].mxu0 %vm347_vm2, %v945_v63 }
  0x97   :  { %1081 = vmatpush1.bf16.msk.msra.mxu0 %vm1401_vm5, %v1079_v1  ;;  %436 = vmatprep.mubr.f32.mxu0 %v1177_v15 }
  0x99   :  { %v206_v5 = vpop.permute.xlu1 %205  ;;  %v204_v6 = vpop.permute.xlu0 %203 }
  0x9a   :  { %v211_v7 = vsel %vm207_vm0, %v198_v2, %v206_v5  ;;  %v210_v8 = vsel %vm207_vm0, %v196_v3, %v204_v6  ;;  %950 = vmatmul.mubr.msk.f32.gmra.mrb[4].mxu0 %vm347_vm2, %v946_v4  ;;  %v215_v12 = vsel %vm207_vm0, %v206_v5, %v198_v2  ;;  %v214_v13 = vsel %vm207_vm0, %v204_v6, %v196_v3  ;;  %v967_v5 = vld [vmem:[%s1613_s1 + $0x58] sm:$0xff] }
  0x9b   :  { %v257_v9 = vadd.f32 %v1337_v28, %v211_v7  ;;  %v255_v10 = vadd.f32 %v1331_v25, %v210_v8  ;;  %442 = vmatprep.mubr.f32.mxu0 %v1177_v15 }
  0x9d   :  { %v1082_v14 = vpack.c.bf16 %v257_v9, %v255_v10  ;;  %v223_v16 = vpop.permute.xlu1 %222  ;;  %v221_v17 = vpop.permute.xlu0 %220 }
  0x9e   :  { %v229_v18 = vsel %vm207_vm0, %v223_v16, %v215_v12  ;;  %v228_v19 = vsel %vm207_vm0, %v221_v17, %v214_v13  ;;  %951 = vmatmul.mubr.msk.f32.gmra.mrb[6].mxu0 %vm347_vm2, %v947_v11 }
  0x9f   :  { %v256_v20 = vadd.f32 %v1337_v28, %v229_v18  ;;  %v254_v21 = vadd.f32 %v1331_v25, %v228_v19  ;;  %1084 = vmatprep.subr.msk.bf16.mxu0 %vm1077_vm3, %v1082_v14  ;;  %525 = vmatprep.mubr.f32.mxu0 %v1177_v15 }
  0xa1   :  { %v1085_v22 = vpack.c.bf16 %v256_v20, %v254_v21  ;;  %v273_v24 = vpop.permute.xlu1 %272  ;;  %v271_v30 = vpop.permute.xlu0 %270 }
  0xa3   :  { %1087 = vmatpush1.bf16.msk.msra.mxu0 %vm1401_vm5, %v1085_v22 }
  0xa5   :  { %v281_v33 = vpop.permute.xlu1 %280  ;;  %v279_v34 = vpop.permute.xlu0 %278 }
  0xa6   :  { %960 = vmatmul.mubr.msk.f32.vlgmr.msra.gmra.mrb[0].mxu0 %vm347_vm2, %v330_v32  ;;  %v288_v35 = vsel %vm167_vm6, %v273_v24, %v281_v33  ;;  %v287_v36 = vsel %vm167_vm6, %v271_v30, %v279_v34  ;;  %v292_v38 = vsel %vm167_vm6, %v281_v33, %v273_v24  ;;  %v291_v39 = vsel %vm167_vm6, %v279_v34, %v271_v30 }
  0xa7   :  { %531 = vmatprep.mubr.f32.mxu0 %v1177_v15  ;;  %v312_v44 = vadd.f32 %v288_v35, %v1339_v29  ;;  %v310_v45 = vadd.f32 %v287_v36, %v1333_v26 }
  0xa9   :  { %v298_v40 = vpop.permute.xlu1 %297  ;;  %v296_v41 = vpop.permute.xlu0 %295 }
  0xaa   :  { %v307_v46 = vsel %vm303_vm7, %v298_v40, %v292_v38  ;;  %v306_v47 = vsel %vm303_vm7, %v296_v41, %v291_v39  ;;  %961 = vmatmul.mubr.msk.f32.gmra.mrb[2].mxu0 %vm347_vm2, %v331_v37 }
  0xab   :  { %v313_v48 = vadd.f32 %v307_v46, %v1339_v29  ;;  %v311_v31 = vadd.f32 %v306_v47, %v1333_v26  ;;  %537 = vmatprep.mubr.f32.mxu0 %v1177_v15  ;;  %v1091_v26 = vpack.c.bf16 %v312_v44, %v310_v45 }
  0xad   :  { %v1088_v49 = vpack.c.bf16 %v313_v48, %v311_v31  ;;  %v277_v50 = vpop.permute.xlu1 %276  ;;  %v275_v51 = vpop.permute.xlu0 %274 }
  0xae   :  { %962 = vmatmul.mubr.msk.f32.gmra.mrb[4].mxu0 %vm347_vm2, %v332_v42 }
  0xaf   :  { %1090 = vmatprep.subr.msk.bf16.mxu0 %vm1089_vm9, %v1088_v49  ;;  %543 = vmatprep.mubr.f32.mxu0 %v1177_v15 }
  0xb0   :  { %1093 = vmatpush1.bf16.msk.msra.mxu0 %vm1485_vm10, %v1091_v26 }
  0xb1   :  { %v285_v53 = vpop.permute.xlu1 %284  ;;  %v283_v54 = vpop.permute.xlu0 %282 }
  0xb2   :  { %963 = vmatmul.mubr.msk.f32.gmra.mrb[6].mxu0 %vm347_vm2, %v333_v52  ;;  %v290_v55 = vsel %vm167_vm6, %v277_v50, %v285_v53  ;;  %v289_v56 = vsel %vm167_vm6, %v275_v51, %v283_v54  ;;  %v294_v57 = vsel %vm167_vm6, %v285_v53, %v277_v50  ;;  %v293_v58 = vsel %vm167_vm6, %v283_v54, %v275_v51 }
  0xb3   :  { %631 = vmatprep.mubr.f32.mxu0 %v1177_v15  ;;  %v316_v61 = vadd.f32 %v290_v55, %v1337_v28  ;;  %v314_v62 = vadd.f32 %v289_v56, %v1331_v25 }
  0xb5   :  { %v302_v59 = vpop.permute.xlu1 %301  ;;  %v300_v60 = vpop.permute.xlu0 %299  ;;  %v1097_v4 = vpack.c.bf16 %v316_v61, %v314_v62 }
  0xb6   :  { %v309_v63 = vsel %vm303_vm7, %v302_v59, %v294_v57  ;;  %v308_v0 = vsel %vm303_vm7, %v300_v60, %v293_v58 }
  0xb7   :  { %v317_v1 = vadd.f32 %v309_v63, %v1337_v28  ;;  %v315_v2 = vadd.f32 %v308_v0, %v1331_v25  ;;  %v965_v25 = vld [vmem:[%s1613_s1 + $0x48] sm:$0xff]  ;;  %v966_v28 = vld [vmem:[%s1613_s1 + $0x50] sm:$0xff] }
  0xb9   :  { %v1094_v3 = vpack.c.bf16 %v317_v1, %v315_v2  ;;  %v670_v7 = vpop.permute.xlu1 %669 }
  0xbb   :  { %1096 = vmatprep.subr.msk.bf16.mxu0 %vm1089_vm9, %v1094_v3 }
  0xbc   :  { %1099 = vmatpush1.bf16.msk.msra.mxu0 %vm1485_vm10, %v1097_v4 }
  0xbd   :  { %1116 = vmatprep.subr.bf16.mxu0 %v1180_v23  ;;  %v674_v18 = vpop.permute.xlu1 %673 }
  0xbf   :  { %976 = vmatmul.mubr.msk.f32.vlgmr.msra.gmra.mrb[0].mxu0 %vm347_vm2, %v964_v27 }
  0xc0   :  { %637 = vmatprep.mubr.f32.mxu0 %v1177_v15  ;;  %1117 = vmatpush3.bf16.msra.mxu0 %v1180_v23 }
  0xc1   :  { %1118 = vmatprep.subr.bf16.mxu0 %v1180_v23 }
  0xc3   :  { %977 = vmatmul.mubr.msk.f32.gmra.mrb[2].mxu0 %vm347_vm2, %v965_v25 }
  0xc4   :  { %643 = vmatprep.mubr.f32.mxu0 %v1177_v15  ;;  %1119 = vmatpush3.bf16.msra.mxu0 %v1180_v23 }
  0xc5   :  { %1120 = vmatprep.subr.bf16.mxu0 %v1180_v23 }
  0xc7   :  { %978 = vmatmul.mubr.msk.f32.gmra.mrb[4].mxu0 %vm347_vm2, %v966_v28 }
  0xc8   :  { %649 = vmatprep.mubr.f32.mxu0 %v1177_v15  ;;  %1121 = vmatpush3.bf16.msra.mxu0 %v1180_v23  ;;  %v666_v15 = vpop.permute.xlu0 %665 }
  0xc9   :  { %1122 = vmatprep.subr.bf16.mxu0 %v1180_v23 }
  0xcb   :  { %979 = vmatmul.mubr.msk.f32.gmra.mrb[6].mxu0 %vm347_vm2, %v967_v5 }
  0xcc   :  { %1123 = vmatpush3.bf16.msra.mxu0 %v1180_v23  ;;  %v678_v35 = vpop.permute.xlu0 %677 }
  0xcd   :  { %1124 = vmatprep.subr.bf16.mxu0 %v1180_v23 }
  0xd0   :  { %1125 = vmatpush3.bf16.msra.mxu0 %v1180_v23 }
  0xd1   :  { %1126 = vmatprep.subr.bf16.mxu0 %v1180_v23 }
  0xd4   :  { %1127 = vmatpush3.bf16.msra.mxu0 %v1180_v23 }
  0xd5   :  { %1128 = vmatprep.subr.bf16.mxu0 %v1180_v23 }
  0xd8   :  { %1129 = vmatpush3.bf16.msra.mxu0 %v1180_v23 }
  0xd9   :  { %1130 = vmatprep.subr.bf16.mxu0 %v1180_v23 }
  0xdc   :  { %1131 = vmatpush3.bf16.msra.mxu0 %v1180_v23 }
 0x192   :  { %v633_v6 = vpop.f32.mrb[0].mxu0 }
 0x193   :  { %v680_v8 = vadd.f32 %v666_v15, %v633_v6  ;;  %v635_v9 = vpop.f32.mrb[1].mxu0 }
 0x194   :  { %v681_v10 = vadd.f32 %v666_v15, %v635_v9 }
 0x195   :  { %v688_v11 = vmax.f32 %v680_v8, 0.0 }
 0x196   :  { %v689_v12 = vmax.f32 %v681_v10, 0.0  ;;  %v639_v13 = vpop.f32.mrb[2].mxu0 }
 0x197   :  { %708 = vst [vmem:[%s1617_s5] sm:$0xff] %v688_v11  ;;  %v682_v14 = vadd.f32 %v670_v7, %v639_v13  ;;  %v641_v16 = vpop.f32.mrb[3].mxu0  ;;  %v801_v20 = vmul.f32 %v688_v11, %v688_v11 }
 0x198   :  { %709 = vst [vmem:[%s1617_s5 + $0x8] sm:$0xff] %v689_v12  ;;  %v683_v17 = vadd.f32 %v670_v7, %v641_v16  ;;  %780 = vmatprep.mubr.f32.mxu1 %v689_v12  ;;  %v802_v19 = vmul.f32 %v689_v12, %v689_v12 }
 0x199   :  { %v690_v21 = vmax.f32 %v682_v14, 0.0  ;;  %781 = vmatmul.mubr.f32.vlgmr.msra.gmra.mrb[0].mxu1 %v688_v11 }
 0x19a   :  { %v691_v22 = vmax.f32 %v683_v17, 0.0  ;;  %1140 = vmatpush3.bf16.msra.mxu1 %v1180_v23  ;;  %v645_v24 = vpop.f32.mrb[4].mxu0  ;;  %873 = vmatprep.mubr.f32.mxu0 %v802_v19 }
 0x19b   :  { %710 = vst [vmem:[%s1617_s5 + $0x10] sm:$0xff] %v690_v21  ;;  %v684_v30 = vadd.f32 %v674_v18, %v645_v24  ;;  %v647_v32 = vpop.f32.mrb[5].mxu0  ;;  %874 = vmatmul.mubr.f32.vlgmr.msra.gmra.mrb[8].mxu0 %v801_v20  ;;  %1133 = vmatprep.subr.bf16.mxu1 %v1180_v23  ;;  %v803_v45 = vmul.f32 %v690_v21, %v690_v21 }
 0x19c   :  { %711 = vst [vmem:[%s1617_s5 + $0x18] sm:$0xff] %v691_v22  ;;  %v685_v33 = vadd.f32 %v674_v18, %v647_v32  ;;  %785 = vmatprep.mubr.f32.mxu1 %v691_v22  ;;  %v804_v44 = vmul.f32 %v691_v22, %v691_v22 }
 0x19d   :  { %v692_v34 = vmax.f32 %v684_v30, 0.0  ;;  %786 = vmatmul.mubr.f32.gmra.mrb[2].mxu1 %v690_v21 }
 0x19e   :  { %v693_v36 = vmax.f32 %v685_v33, 0.0  ;;  %1141 = vmatpush3.bf16.msra.mxu1 %v1180_v23  ;;  %v651_v37 = vpop.f32.mrb[6].mxu0 }
 0x19f   :  { %712 = vst [vmem:[%s1617_s5 + $0x20] sm:$0xff] %v692_v34  ;;  %v686_v38 = vadd.f32 %v678_v35, %v651_v37  ;;  %v653_v39 = vpop.f32.mrb[7].mxu0  ;;  %1134 = vmatprep.subr.bf16.mxu1 %v1180_v23  ;;  %v805_v47 = vmul.f32 %v692_v34, %v692_v34 }
 0x1a0   :  { %713 = vst [vmem:[%s1617_s5 + $0x28] sm:$0xff] %v693_v36  ;;  %v687_v40 = vadd.f32 %v678_v35, %v653_v39  ;;  %790 = vmatprep.mubr.f32.mxu1 %v693_v36  ;;  %v806_v46 = vmul.f32 %v693_v36, %v693_v36 }
 0x1a1   :  { %v694_v41 = vmax.f32 %v686_v38, 0.0  ;;  %791 = vmatmul.mubr.f32.gmra.mrb[4].mxu1 %v692_v34 }
 0x1a2   :  { %v695_v43 = vmax.f32 %v687_v40, 0.0  ;;  %1142 = vmatpush3.bf16.msra.mxu1 %v1180_v23 }
 0x1a3   :  { %714 = vst [vmem:[%s1617_s5 + $0x30] sm:$0xff] %v694_v41  ;;  %1135 = vmatprep.subr.bf16.mxu1 %v1180_v23  ;;  %v807_v31 = vmul.f32 %v694_v41, %v694_v41 }
 0x1a4   :  { %715 = vst [vmem:[%s1617_s5 + $0x38] sm:$0xff] %v695_v43  ;;  %795 = vmatprep.mubr.f32.mxu1 %v695_v43  ;;  %v808_v48 = vmul.f32 %v695_v43, %v695_v43  ;;  %s1181_s5 = smov 1  }
 0x1a5   :  { %796 = vmatmul.mubr.f32.gmra.mrb[6].mxu1 %v694_v41 }
 0x1a6   :  { %1143 = vmatpush3.bf16.msra.mxu1 %v1180_v23  ;;  %878 = vmatprep.mubr.f32.mxu1 %v804_v44 }
 0x1a7   :  { %1136 = vmatprep.subr.bf16.mxu1 %v1180_v23 }
 0x1aa   :  { %1144 = vmatpush3.bf16.msra.mxu1 %v1180_v23 }
 0x1ab   :  { %1137 = vmatprep.subr.bf16.mxu1 %v1180_v23 }
 0x1ae   :  { %1145 = vmatpush3.bf16.msra.mxu1 %v1180_v23 }
 0x1af   :  { %1138 = vmatprep.subr.bf16.mxu1 %v1180_v23 }
 0x1b2   :  { %1146 = vmatpush3.bf16.msra.mxu1 %v1180_v23 }
 0x1b3   :  { %1139 = vmatprep.subr.bf16.mxu1 %v1180_v23 }
 0x1b6   :  { %1147 = vmatpush3.bf16.msra.mxu1 %v1180_v23 }
 0x1b9   :  { %879 = vmatmul.mubr.f32.vlgmr.msra.gmra.mrb[8].mxu1 %v803_v45 }
 0x1ba   :  { %883 = vmatprep.mubr.f32.mxu1 %v806_v46 }
 0x1bd   :  { %884 = vmatmul.mubr.f32.gmra.mrb[10].mxu1 %v805_v47 }
 0x1be   :  { %888 = vmatprep.mubr.f32.mxu1 %v808_v48 }
 0x1c1   :  { %889 = vmatmul.mubr.f32.gmra.mrb[12].mxu1 %v807_v31 }
 0x26c   :  { %v1012_v42 = vpop.f32.mrb[0].mxu1 }
 0x26d   :  { %v1013_v49 = vpop.f32.mrb[1].mxu1 }
 0x26e   :  { %v1014_v50 = vadd.f32 %v1013_v49, %v1012_v42  ;;  %v1056_v51 = vpop.f32.mrb[8].mxu0 }
 0x26f   :  { %v1057_v29 = vpop.f32.mrb[9].mxu0 }
 0x270   :  { %v1058_v26 = vadd.f32 %v1057_v29, %v1056_v51  ;;  %v1015_v52 = vpop.f32.mrb[2].mxu1 }
 0x271   :  { %v1016_v53 = vpop.f32.mrb[3].mxu1 }
 0x272   :  { %v1017_v54 = vadd.f32 %v1016_v53, %v1015_v52  ;;  %898 = vrot.lane.b32.xlu1 %v1058_v26, %s1181_s5 }
 0x274   :  { %v1018_v23 = vpop.f32.mrb[4].mxu1 }
 0x275   :  { %v1019_v55 = vpop.f32.mrb[5].mxu1 }
 0x276   :  { %v1020_v56 = vadd.f32 %v1019_v55, %v1018_v23 }
 0x278   :  { %v1021_v57 = vpop.f32.mrb[6].mxu1 }
 0x279   :  { %v1022_v58 = vpop.f32.mrb[7].mxu1 }
 0x27a   :  { %v1023_v59 = vadd.f32 %v1022_v58, %v1021_v57 }
 0x28c   :  { %v1059_v60 = vpop.f32.mrb[8].mxu1 }
 0x28d   :  { %v1060_v61 = vpop.f32.mrb[9].mxu1 }
 0x28e   :  { %v1061_v62 = vadd.f32 %v1060_v61, %v1059_v60 }
 0x290   :  { %v1062_v63 = vpop.f32.mrb[10].mxu1  ;;  %900 = vrot.lane.b32.xlu0 %v1061_v62, %s1181_s5 }
 0x291   :  { %v1063_v0 = vpop.f32.mrb[11].mxu1 }
 0x292   :  { %v1064_v1 = vadd.f32 %v1063_v0, %v1062_v63 }
 0x294   :  { %v1065_v2 = vpop.f32.mrb[12].mxu1  ;;  %902 = vrot.lane.b32.xlu1 %v1064_v1, %s1181_s5 }
 0x295   :  { %v1066_v3 = vpop.f32.mrb[13].mxu1 }
 0x296   :  { %v1067_v4 = vadd.f32 %v1066_v3, %v1065_v2 }
 0x298   :  { %904 = vrot.lane.b32.xlu0 %v1067_v4, %s1181_s5 }
 0x2e4   :  { %v899_v27 = vpop.permute.xlu1 %898 }
 0x2e5   :  { %v911_v25 = vsel %vm910_vm11, %v1014_v50, %v899_v27 }
 0x2e6   :  { %916 = vst.msk [vmem:[%s1618_s6] sm:$0xff] %vm915_vm12, %v911_v25 }
 0x302   :  { %v901_v28 = vpop.permute.xlu0 %900 }
 0x303   :  { %v912_v5 = vsel %vm910_vm11, %v1017_v54, %v901_v28 }
 0x304   :  { %917 = vst.msk [vmem:[%s1618_s6 + $0x8] sm:$0xff] %vm915_vm12, %v912_v5 }
 0x306   :  { %v903_v15 = vpop.permute.xlu1 %902 }
 0x307   :  { %v913_v6 = vsel %vm910_vm11, %v1020_v56, %v903_v15 }
 0x308   :  { %918 = vst.msk [vmem:[%s1618_s6 + $0x10] sm:$0xff] %vm915_vm12, %v913_v6 }
 0x30a   :  { %v905_v7 = vpop.permute.xlu0 %904 }
 0x30b   :  { %v914_v8 = vsel %vm910_vm11, %v1023_v59, %v905_v7 }
 0x30c   :  { %919 = vst.msk [vmem:[%s1618_s6 + $0x18] sm:$0xff] %vm915_vm12, %v914_v8 }

// kernel: tcn2_forward.6
= control target key start
LH: loop header
LB: loop body
LE: loop exit
PB: predicated region body
PF: predicated region fallthrough
CT: control target
= control target key end

     0   :  { %v1175_v2 = vmov 0   ;;  %s1176_s9 = smov 4   ;;  %v1177_v15 = vmov 0.0   ;;  %s1178_s29 = smov 124   ;;  %v1179_v22 = vmov 1   ;;  %v134_v24 = vlaneseq  ;;  %s1612_s0 = inlined_call_operand.vmem [shape: f32[32,2], index: 0, kind: input, shape index: {}]   ;;  %s1613_s1 = inlined_call_operand.vmem [shape: f32[3,32,32], index: 1, kind: input, shape index: {}]   ;;  %s1614_s2 = inlined_call_operand.vmem [shape: f32[32,256], index: 2, kind: input, shape index: {}, may-alias: {2,3,4}]   ;;  %s1615_s3 = inlined_call_operand.vmem [shape: f32[32,256], index: 3, kind: input, shape index: {}, may-alias: {2,3,4}]   ;;  %s1616_s4 = inlined_call_operand.vmem [shape: f32[32,256], index: 4, kind: input, shape index: {}, may-alias: {2,3,4}]   ;;  %s1617_s5 = inlined_call_operand.vmem [shape: f32[32,256], index: 5, kind: output, shape index: {0}]   ;;  %s1618_s6 = inlined_call_operand.vmem [shape: f32[1,32,2], index: 6, kind: output, shape index: {1}]  }
   0x1   :  { %v1220_v0 = vld [vmem:[%s1612_s0 + $0x10] sm:$0xff]  ;;  %v171_v1 = vld [vmem:[%s1612_s0] sm:$0xff]  ;;  %1172 = vset.pattern.permute.xlu1 %v1175_v2  ;;  %1171 = vset.pattern.permute.xlu0 %v1175_v2  ;;  %v174_v3 = vld [vmem:[%s1612_s0 + $0x18] sm:$0xff]  ;;  %v1180_v23 = vmov 1.0|1.0   ;;  %vm347_vm2 = vcmask 261120  }
   0x2   :  { %242 = vperm.xlu1 %1172, %v1220_v0   ;;  %232 = vperm.xlu0 %1171, %v171_v1   ;;  %v172_v4 = vld [vmem:[%s1612_s0 + $0x8] sm:$0xff]  ;;  %v1235_v5 = vld [vmem:[%s1614_s2 + $0x10] sm:$0xff]  ;;  %v1240_v6 = vld [vmem:[%s1614_s2] sm:$0xff]  ;;  %v1335_v27 = vand.u32 127, %v134_v24  ;;  %vm910_vm11 = vcmask 7168   ;;  %vm915_vm12 = vcmask 15360  }
   0x3   :  { %v1247_v7 = vld [vmem:[%s1614_s2 + $0x18] sm:$0xff]  ;;  %v1252_v8 = vld [vmem:[%s1614_s2 + $0x8] sm:$0xff]  ;;  %v61_v9 = vld [vmem:[%s1615_s3 + $0x10] sm:$0xff]  ;;  %424 = vmatprep.mubr.f32.mxu0 %v1177_v15  ;;  %1100 = vmatprep.subr.bf16.mxu1 %v1180_v23 }
   0x4   :  { %v59_v10 = vld [vmem:[%s1615_s3] sm:$0xff]  ;;  %v1265_v11 = vld [vmem:[%s1614_s2 + $0x30] sm:$0xff]  ;;  %v1277_v13 = vld [vmem:[%s1614_s2 + $0x38] sm:$0xff]  ;;  %1101 = vmatpush3.bf16.msra.mxu1 %v1180_v23  ;;  %v1344_v31 = vadd.s32 128, %v1335_v27  ;;  %vm207_vm0 = vcmp.lt.s32.totalorder %v1335_v27, 4  ;;  %vm165_vm4 = vcmp.ge.s32.totalorder %v1335_v27, 4 }
   0x5   :  { %v1270_v12 = vld [vmem:[%s1614_s2 + $0x20] sm:$0xff]  ;;  %v1282_v14 = vld [vmem:[%s1614_s2 + $0x28] sm:$0xff]  ;;  %v65_v16 = vld [vmem:[%s1615_s3 + $0x30] sm:$0xff]  ;;  %1102 = vmatprep.subr.bf16.mxu1 %v1180_v23  ;;  %vm167_vm6 = vcmp.lt.s32.totalorder %v1335_v27, 124  ;;  %vm303_vm7 = vcmp.ge.s32.totalorder %v1335_v27, 124 }
   0x6   :  { %247 = vperm.xlu1 %1172, %v174_v3   ;;  %237 = vperm.xlu0 %1171, %v172_v4   ;;  %v63_v17 = vld [vmem:[%s1615_s3 + $0x20] sm:$0xff]  ;;  %v941_v18 = vld [vmem:[%s1616_s4 + $0x18] sm:$0xff]  ;;  %v940_v19 = vld [vmem:[%s1616_s4 + $0x8] sm:$0xff]  ;;  %v152_v42 = vand.u32 127, %v1344_v31 }
   0x7   :  { %v943_v20 = vld [vmem:[%s1616_s4 + $0x38] sm:$0xff]  ;;  %v942_v21 = vld [vmem:[%s1616_s4 + $0x28] sm:$0xff]  ;;  %v944_v53 = vld [vmem:[%s1613_s1 + $0x20] sm:$0xff] }
   0x8   :  { %1103 = vmatpush3.bf16.msra.mxu1 %v1180_v23  ;;  %vm1364_vm1 = vcmp.ge.s32.totalorder %v152_v42, 4  ;;  %v945_v63 = vld [vmem:[%s1613_s1 + $0x28] sm:$0xff]  ;;  %vm1401_vm5 = vmpackc.low %vm165_vm4, %vm165_vm4  ;;  %vm1462_vm8 = vcmp.lt.s32.totalorder %v152_v42, 124  ;;  %v332_v42 = vld [vmem:[%s1613_s1 + $0x10] sm:$0xff] }
   0x9   :  { %1104 = vmatprep.subr.bf16.mxu1 %v1180_v23  ;;  %vm1077_vm3 = vmpackc.low %vm1364_vm1, %vm1364_vm1  ;;  %v964_v27 = vld [vmem:[%s1613_s1 + $0x40] sm:$0xff] }
   0xa   :  { %193 = vrot.lane.b32.xlu1 %v1235_v5, %s1176_s9  ;;  %191 = vrot.lane.b32.xlu0 %v1240_v6, %s1176_s9  ;;  %vm1089_vm9 = vmpackc.low %vm1462_vm8, %vm1462_vm8 }
   0xb   :  { %1173 = vset.pattern.permute.xlu0 %v1179_v22  ;;  %1174 = vset.pattern.permute.xlu1 %v1179_v22  ;;  %vm1485_vm10 = vmpackc.low %vm167_vm6, %vm167_vm6 }
   0xc   :  { %1105 = vmatpush3.bf16.msra.mxu1 %v1180_v23 }
   0xd   :  { %1106 = vmatprep.subr.bf16.mxu1 %v1180_v23 }
   0xe   :  { %201 = vrot.lane.b32.xlu1 %v1247_v7, %s1176_s9  ;;  %199 = vrot.lane.b32.xlu0 %v1252_v8, %s1176_s9 }
  0x10   :  { %1107 = vmatpush3.bf16.msra.mxu1 %v1180_v23 }
  0x11   :  { %1108 = vmatprep.subr.bf16.mxu1 %v1180_v23 }
  0x12   :  { %218 = vrot.lane.b32.xlu1 %v61_v9, %s1176_s9  ;;  %216 = vrot.lane.b32.xlu0 %v59_v10, %s1176_s9 }
  0x14   :  { %1109 = vmatpush3.bf16.msra.mxu1 %v1180_v23 }
  0x15   :  { %1110 = vmatprep.subr.bf16.mxu1 %v1180_v23 }
  0x16   :  { %197 = vrot.lane.b32.xlu1 %v1265_v11, %s1176_s9  ;;  %195 = vrot.lane.b32.xlu0 %v1270_v12, %s1176_s9 }
  0x18   :  { %1111 = vmatpush3.bf16.msra.mxu1 %v1180_v23 }
  0x19   :  { %1112 = vmatprep.subr.bf16.mxu1 %v1180_v23 }
  0x1a   :  { %205 = vrot.lane.b32.xlu1 %v1277_v13, %s1176_s9  ;;  %203 = vrot.lane.b32.xlu0 %v1282_v14, %s1176_s9 }
  0x1c   :  { %1113 = vmatpush3.bf16.msra.mxu1 %v1180_v23 }
  0x1d   :  { %1114 = vmatprep.subr.bf16.mxu1 %v1180_v23 }
  0x1e   :  { %222 = vrot.lane.b32.xlu1 %v65_v16, %s1176_s9  ;;  %220 = vrot.lane.b32.xlu0 %v63_v17, %s1176_s9 }
  0x20   :  { %1115 = vmatpush3.bf16.msra.mxu1 %v1180_v23 }
  0x21   :  { %1132 = vmatprep.subr.bf16.mxu1 %v1180_v23 }
  0x22   :  { %272 = vrot.lane.b32.xlu1 %v1235_v5, %s1178_s29  ;;  %270 = vrot.lane.b32.xlu0 %v1240_v6, %s1178_s29 }
  0x26   :  { %280 = vrot.lane.b32.xlu1 %v1247_v7, %s1178_s29  ;;  %278 = vrot.lane.b32.xlu0 %v1252_v8, %s1178_s29 }
  0x2a   :  { %297 = vrot.lane.b32.xlu1 %v941_v18, %s1178_s29  ;;  %295 = vrot.lane.b32.xlu0 %v940_v19, %s1178_s29 }
  0x2e   :  { %276 = vrot.lane.b32.xlu1 %v1265_v11, %s1178_s29  ;;  %274 = vrot.lane.b32.xlu0 %v1270_v12, %s1178_s29 }
  0x32   :  { %284 = vrot.lane.b32.xlu1 %v1277_v13, %s1178_s29  ;;  %282 = vrot.lane.b32.xlu0 %v1282_v14, %s1178_s29 }
  0x36   :  { %301 = vrot.lane.b32.xlu1 %v943_v20, %s1178_s29  ;;  %299 = vrot.lane.b32.xlu0 %v942_v21, %s1178_s29 }
  0x3a   :  { %665 = vperm.xlu0 %1173, %v171_v1   ;;  %669 = vperm.xlu1 %1174, %v172_v4   ;;  %v946_v4 = vld [vmem:[%s1613_s1 + $0x30] sm:$0xff] }
  0x3e   :  { %677 = vperm.xlu0 %1173, %v174_v3   ;;  %673 = vperm.xlu1 %1174, %v1220_v0  }
  0x81   :  { %v1331_v25 = vpop.permute.xlu1 %242  ;;  %v1333_v26 = vpop.permute.xlu0 %232 }
  0x82   :  { %v340_v30 = vadd.f32 %v1333_v26, %v1252_v8  ;;  %v339_v33 = vadd.f32 %v1333_v26, %v1240_v6  ;;  %v344_v38 = vadd.f32 %v1331_v25, %v1282_v14  ;;  %v343_v44 = vadd.f32 %v1331_v25, %v1270_v12 }
  0x85   :  { %v1337_v28 = vpop.permute.xlu1 %247  ;;  %v1339_v29 = vpop.permute.xlu0 %237 }
  0x86   :  { %v342_v32 = vadd.f32 %v1339_v29, %v1247_v7  ;;  %v341_v34 = vadd.f32 %v1339_v29, %v1235_v5  ;;  %v346_v35 = vadd.f32 %v1337_v28, %v1277_v13  ;;  %v345_v41 = vadd.f32 %v1337_v28, %v1265_v11  ;;  %v947_v11 = vld [vmem:[%s1613_s1 + $0x38] sm:$0xff] }
  0x88   :  { %v1068_v36 = vpack.c.bf16 %v342_v32, %v340_v30  ;;  %v1070_v37 = vpack.c.bf16 %v341_v34, %v339_v33  ;;  %v1072_v43 = vpack.c.bf16 %v346_v35, %v344_v38  ;;  %v1074_v47 = vpack.c.bf16 %v345_v41, %v343_v44  ;;  %v330_v32 = vld [vmem:[%s1613_s1] sm:$0xff] }
  0x89   :  { %v194_v39 = vpop.permute.xlu1 %193  ;;  %v192_v40 = vpop.permute.xlu0 %191 }
  0x8a   :  { %1069 = vmatprep.subr.bf16.mxu0 %v1068_v36 }
  0x8b   :  { %1071 = vmatpush1.bf16.msra.mxu0 %v1070_v37  ;;  %v331_v37 = vld [vmem:[%s1613_s1 + $0x8] sm:$0xff] }
  0x8c   :  { %1073 = vmatprep.subr.bf16.mxu0 %v1072_v43 }
  0x8d   :  { %v202_v45 = vpop.permute.xlu1 %201  ;;  %v200_v46 = vpop.permute.xlu0 %199 }
  0x8e   :  { %v209_v49 = vsel %vm207_vm0, %v194_v39, %v202_v45  ;;  %v208_v50 = vsel %vm207_vm0, %v192_v40, %v200_v46  ;;  %v213_v54 = vsel %vm207_vm0, %v202_v45, %v194_v39  ;;  %v212_v55 = vsel %vm207_vm0, %v200_v46, %v192_v40 }
  0x8f   :  { %v253_v51 = vadd.f32 %v1339_v29, %v209_v49  ;;  %v251_v52 = vadd.f32 %v1333_v26, %v208_v50  ;;  %1075 = vmatpush1.bf16.msra.mxu0 %v1074_v47 }
  0x91   :  { %v1076_v56 = vpack.c.bf16 %v253_v51, %v251_v52  ;;  %v219_v57 = vpop.permute.xlu1 %218  ;;  %v217_v58 = vpop.permute.xlu0 %216  ;;  %v333_v52 = vld [vmem:[%s1613_s1 + $0x18] sm:$0xff] }
  0x92   :  { %v227_v59 = vsel %vm207_vm0, %v219_v57, %v213_v54  ;;  %v226_v60 = vsel %vm207_vm0, %v217_v58, %v212_v55  ;;  %948 = vmatmul.mubr.msk.f32.vlgmr.msra.gmra.mrb[0].mxu0 %vm347_vm2, %v944_v53 }
  0x93   :  { %v252_v61 = vadd.f32 %v1339_v29, %v227_v59  ;;  %v250_v62 = vadd.f32 %v1333_v26, %v226_v60  ;;  %1078 = vmatprep.subr.msk.bf16.mxu0 %vm1077_vm3, %v1076_v56  ;;  %430 = vmatprep.mubr.f32.mxu0 %v1177_v15 }
  0x95   :  { %v1079_v1 = vpack.c.bf16 %v252_v61, %v250_v62  ;;  %v198_v2 = vpop.permute.xlu1 %197  ;;  %v196_v3 = vpop.permute.xlu0 %195 }
  0x96   :  { %949 = vmatmul.mubr.msk.f32.gmra.mrb[2].mxu0 %vm347_vm2, %v945_v63 }
  0x97   :  { %1081 = vmatpush1.bf16.msk.msra.mxu0 %vm1401_vm5, %v1079_v1  ;;  %436 = vmatprep.mubr.f32.mxu0 %v1177_v15 }
  0x99   :  { %v206_v5 = vpop.permute.xlu1 %205  ;;  %v204_v6 = vpop.permute.xlu0 %203 }
  0x9a   :  { %v211_v7 = vsel %vm207_vm0, %v198_v2, %v206_v5  ;;  %v210_v8 = vsel %vm207_vm0, %v196_v3, %v204_v6  ;;  %950 = vmatmul.mubr.msk.f32.gmra.mrb[4].mxu0 %vm347_vm2, %v946_v4  ;;  %v215_v12 = vsel %vm207_vm0, %v206_v5, %v198_v2  ;;  %v214_v13 = vsel %vm207_vm0, %v204_v6, %v196_v3  ;;  %v967_v5 = vld [vmem:[%s1613_s1 + $0x58] sm:$0xff] }
  0x9b   :  { %v257_v9 = vadd.f32 %v1337_v28, %v211_v7  ;;  %v255_v10 = vadd.f32 %v1331_v25, %v210_v8  ;;  %442 = vmatprep.mubr.f32.mxu0 %v1177_v15 }
  0x9d   :  { %v1082_v14 = vpack.c.bf16 %v257_v9, %v255_v10  ;;  %v223_v16 = vpop.permute.xlu1 %222  ;;  %v221_v17 = vpop.permute.xlu0 %220 }
  0x9e   :  { %v229_v18 = vsel %vm207_vm0, %v223_v16, %v215_v12  ;;  %v228_v19 = vsel %vm207_vm0, %v221_v17, %v214_v13  ;;  %951 = vmatmul.mubr.msk.f32.gmra.mrb[6].mxu0 %vm347_vm2, %v947_v11 }
  0x9f   :  { %v256_v20 = vadd.f32 %v1337_v28, %v229_v18  ;;  %v254_v21 = vadd.f32 %v1331_v25, %v228_v19  ;;  %1084 = vmatprep.subr.msk.bf16.mxu0 %vm1077_vm3, %v1082_v14  ;;  %525 = vmatprep.mubr.f32.mxu0 %v1177_v15 }
  0xa1   :  { %v1085_v22 = vpack.c.bf16 %v256_v20, %v254_v21  ;;  %v273_v24 = vpop.permute.xlu1 %272  ;;  %v271_v30 = vpop.permute.xlu0 %270 }
  0xa3   :  { %1087 = vmatpush1.bf16.msk.msra.mxu0 %vm1401_vm5, %v1085_v22 }
  0xa5   :  { %v281_v33 = vpop.permute.xlu1 %280  ;;  %v279_v34 = vpop.permute.xlu0 %278 }
  0xa6   :  { %960 = vmatmul.mubr.msk.f32.vlgmr.msra.gmra.mrb[0].mxu0 %vm347_vm2, %v330_v32  ;;  %v288_v35 = vsel %vm167_vm6, %v273_v24, %v281_v33  ;;  %v287_v36 = vsel %vm167_vm6, %v271_v30, %v279_v34  ;;  %v292_v38 = vsel %vm167_vm6, %v281_v33, %v273_v24  ;;  %v291_v39 = vsel %vm167_vm6, %v279_v34, %v271_v30 }
  0xa7   :  { %531 = vmatprep.mubr.f32.mxu0 %v1177_v15  ;;  %v312_v44 = vadd.f32 %v288_v35, %v1339_v29  ;;  %v310_v45 = vadd.f32 %v287_v36, %v1333_v26 }
  0xa9   :  { %v298_v40 = vpop.permute.xlu1 %297  ;;  %v296_v41 = vpop.permute.xlu0 %295 }
  0xaa   :  { %v307_v46 = vsel %vm303_vm7, %v298_v40, %v292_v38  ;;  %v306_v47 = vsel %vm303_vm7, %v296_v41, %v291_v39  ;;  %961 = vmatmul.mubr.msk.f32.gmra.mrb[2].mxu0 %vm347_vm2, %v331_v37 }
  0xab   :  { %v313_v48 = vadd.f32 %v307_v46, %v1339_v29  ;;  %v311_v31 = vadd.f32 %v306_v47, %v1333_v26  ;;  %537 = vmatprep.mubr.f32.mxu0 %v1177_v15  ;;  %v1091_v26 = vpack.c.bf16 %v312_v44, %v310_v45 }
  0xad   :  { %v1088_v49 = vpack.c.bf16 %v313_v48, %v311_v31  ;;  %v277_v50 = vpop.permute.xlu1 %276  ;;  %v275_v51 = vpop.permute.xlu0 %274 }
  0xae   :  { %962 = vmatmul.mubr.msk.f32.gmra.mrb[4].mxu0 %vm347_vm2, %v332_v42 }
  0xaf   :  { %1090 = vmatprep.subr.msk.bf16.mxu0 %vm1089_vm9, %v1088_v49  ;;  %543 = vmatprep.mubr.f32.mxu0 %v1177_v15 }
  0xb0   :  { %1093 = vmatpush1.bf16.msk.msra.mxu0 %vm1485_vm10, %v1091_v26 }
  0xb1   :  { %v285_v53 = vpop.permute.xlu1 %284  ;;  %v283_v54 = vpop.permute.xlu0 %282 }
  0xb2   :  { %963 = vmatmul.mubr.msk.f32.gmra.mrb[6].mxu0 %vm347_vm2, %v333_v52  ;;  %v290_v55 = vsel %vm167_vm6, %v277_v50, %v285_v53  ;;  %v289_v56 = vsel %vm167_vm6, %v275_v51, %v283_v54  ;;  %v294_v57 = vsel %vm167_vm6, %v285_v53, %v277_v50  ;;  %v293_v58 = vsel %vm167_vm6, %v283_v54, %v275_v51 }
  0xb3   :  { %631 = vmatprep.mubr.f32.mxu0 %v1177_v15  ;;  %v316_v61 = vadd.f32 %v290_v55, %v1337_v28  ;;  %v314_v62 = vadd.f32 %v289_v56, %v1331_v25 }
  0xb5   :  { %v302_v59 = vpop.permute.xlu1 %301  ;;  %v300_v60 = vpop.permute.xlu0 %299  ;;  %v1097_v4 = vpack.c.bf16 %v316_v61, %v314_v62 }
  0xb6   :  { %v309_v63 = vsel %vm303_vm7, %v302_v59, %v294_v57  ;;  %v308_v0 = vsel %vm303_vm7, %v300_v60, %v293_v58 }
  0xb7   :  { %v317_v1 = vadd.f32 %v309_v63, %v1337_v28  ;;  %v315_v2 = vadd.f32 %v308_v0, %v1331_v25  ;;  %v965_v25 = vld [vmem:[%s1613_s1 + $0x48] sm:$0xff]  ;;  %v966_v28 = vld [vmem:[%s1613_s1 + $0x50] sm:$0xff] }
  0xb9   :  { %v1094_v3 = vpack.c.bf16 %v317_v1, %v315_v2  ;;  %v670_v7 = vpop.permute.xlu1 %669 }
  0xbb   :  { %1096 = vmatprep.subr.msk.bf16.mxu0 %vm1089_vm9, %v1094_v3 }
  0xbc   :  { %1099 = vmatpush1.bf16.msk.msra.mxu0 %vm1485_vm10, %v1097_v4 }
  0xbd   :  { %1116 = vmatprep.subr.bf16.mxu0 %v1180_v23  ;;  %v674_v18 = vpop.permute.xlu1 %673 }
  0xbf   :  { %976 = vmatmul.mubr.msk.f32.vlgmr.msra.gmra.mrb[0].mxu0 %vm347_vm2, %v964_v27 }
  0xc0   :  { %637 = vmatprep.mubr.f32.mxu0 %v1177_v15  ;;  %1117 = vmatpush3.bf16.msra.mxu0 %v1180_v23 }
  0xc1   :  { %1118 = vmatprep.subr.bf16.mxu0 %v1180_v23 }
  0xc3   :  { %977 = vmatmul.mubr.msk.f32.gmra.mrb[2].mxu0 %vm347_vm2, %v965_v25 }
  0xc4   :  { %643 = vmatprep.mubr.f32.mxu0 %v1177_v15  ;;  %1119 = vmatpush3.bf16.msra.mxu0 %v1180_v23 }
  0xc5   :  { %1120 = vmatprep.subr.bf16.mxu0 %v1180_v23 }
  0xc7   :  { %978 = vmatmul.mubr.msk.f32.gmra.mrb[4].mxu0 %vm347_vm2, %v966_v28 }
  0xc8   :  { %649 = vmatprep.mubr.f32.mxu0 %v1177_v15  ;;  %1121 = vmatpush3.bf16.msra.mxu0 %v1180_v23  ;;  %v666_v15 = vpop.permute.xlu0 %665 }
  0xc9   :  { %1122 = vmatprep.subr.bf16.mxu0 %v1180_v23 }
  0xcb   :  { %979 = vmatmul.mubr.msk.f32.gmra.mrb[6].mxu0 %vm347_vm2, %v967_v5 }
  0xcc   :  { %1123 = vmatpush3.bf16.msra.mxu0 %v1180_v23  ;;  %v678_v35 = vpop.permute.xlu0 %677 }
  0xcd   :  { %1124 = vmatprep.subr.bf16.mxu0 %v1180_v23 }
  0xd0   :  { %1125 = vmatpush3.bf16.msra.mxu0 %v1180_v23 }
  0xd1   :  { %1126 = vmatprep.subr.bf16.mxu0 %v1180_v23 }
  0xd4   :  { %1127 = vmatpush3.bf16.msra.mxu0 %v1180_v23 }
  0xd5   :  { %1128 = vmatprep.subr.bf16.mxu0 %v1180_v23 }
  0xd8   :  { %1129 = vmatpush3.bf16.msra.mxu0 %v1180_v23 }
  0xd9   :  { %1130 = vmatprep.subr.bf16.mxu0 %v1180_v23 }
  0xdc   :  { %1131 = vmatpush3.bf16.msra.mxu0 %v1180_v23 }
 0x192   :  { %v633_v6 = vpop.f32.mrb[0].mxu0 }
 0x193   :  { %v680_v8 = vadd.f32 %v666_v15, %v633_v6  ;;  %v635_v9 = vpop.f32.mrb[1].mxu0 }
 0x194   :  { %v681_v10 = vadd.f32 %v666_v15, %v635_v9 }
 0x195   :  { %v688_v11 = vmax.f32 %v680_v8, 0.0 }
 0x196   :  { %v689_v12 = vmax.f32 %v681_v10, 0.0  ;;  %v639_v13 = vpop.f32.mrb[2].mxu0 }
 0x197   :  { %708 = vst [vmem:[%s1617_s5] sm:$0xff] %v688_v11  ;;  %v682_v14 = vadd.f32 %v670_v7, %v639_v13  ;;  %v641_v16 = vpop.f32.mrb[3].mxu0  ;;  %v801_v20 = vmul.f32 %v688_v11, %v688_v11 }
 0x198   :  { %709 = vst [vmem:[%s1617_s5 + $0x8] sm:$0xff] %v689_v12  ;;  %v683_v17 = vadd.f32 %v670_v7, %v641_v16  ;;  %780 = vmatprep.mubr.f32.mxu1 %v689_v12  ;;  %v802_v19 = vmul.f32 %v689_v12, %v689_v12 }
 0x199   :  { %v690_v21 = vmax.f32 %v682_v14, 0.0  ;;  %781 = vmatmul.mubr.f32.vlgmr.msra.gmra.mrb[0].mxu1 %v688_v11 }
 0x19a   :  { %v691_v22 = vmax.f32 %v683_v17, 0.0  ;;  %1140 = vmatpush3.bf16.msra.mxu1 %v1180_v23  ;;  %v645_v24 = vpop.f32.mrb[4].mxu0  ;;  %873 = vmatprep.mubr.f32.mxu0 %v802_v19 }
 0x19b   :  { %710 = vst [vmem:[%s1617_s5 + $0x10] sm:$0xff] %v690_v21  ;;  %v684_v30 = vadd.f32 %v674_v18, %v645_v24  ;;  %v647_v32 = vpop.f32.mrb[5].mxu0  ;;  %874 = vmatmul.mubr.f32.vlgmr.msra.gmra.mrb[8].mxu0 %v801_v20  ;;  %1133 = vmatprep.subr.bf16.mxu1 %v1180_v23  ;;  %v803_v45 = vmul.f32 %v690_v21, %v690_v21 }
 0x19c   :  { %711 = vst [vmem:[%s1617_s5 + $0x18] sm:$0xff] %v691_v22  ;;  %v685_v33 = vadd.f32 %v674_v18, %v647_v32  ;;  %785 = vmatprep.mubr.f32.mxu1 %v691_v22  ;;  %v804_v44 = vmul.f32 %v691_v22, %v691_v22 }
 0x19d   :  { %v692_v34 = vmax.f32 %v684_v30, 0.0  ;;  %786 = vmatmul.mubr.f32.gmra.mrb[2].mxu1 %v690_v21 }
 0x19e   :  { %v693_v36 = vmax.f32 %v685_v33, 0.0  ;;  %1141 = vmatpush3.bf16.msra.mxu1 %v1180_v23  ;;  %v651_v37 = vpop.f32.mrb[6].mxu0 }
 0x19f   :  { %712 = vst [vmem:[%s1617_s5 + $0x20] sm:$0xff] %v692_v34  ;;  %v686_v38 = vadd.f32 %v678_v35, %v651_v37  ;;  %v653_v39 = vpop.f32.mrb[7].mxu0  ;;  %1134 = vmatprep.subr.bf16.mxu1 %v1180_v23  ;;  %v805_v47 = vmul.f32 %v692_v34, %v692_v34 }
 0x1a0   :  { %713 = vst [vmem:[%s1617_s5 + $0x28] sm:$0xff] %v693_v36  ;;  %v687_v40 = vadd.f32 %v678_v35, %v653_v39  ;;  %790 = vmatprep.mubr.f32.mxu1 %v693_v36  ;;  %v806_v46 = vmul.f32 %v693_v36, %v693_v36 }
 0x1a1   :  { %v694_v41 = vmax.f32 %v686_v38, 0.0  ;;  %791 = vmatmul.mubr.f32.gmra.mrb[4].mxu1 %v692_v34 }
 0x1a2   :  { %v695_v43 = vmax.f32 %v687_v40, 0.0  ;;  %1142 = vmatpush3.bf16.msra.mxu1 %v1180_v23 }
 0x1a3   :  { %714 = vst [vmem:[%s1617_s5 + $0x30] sm:$0xff] %v694_v41  ;;  %1135 = vmatprep.subr.bf16.mxu1 %v1180_v23  ;;  %v807_v31 = vmul.f32 %v694_v41, %v694_v41 }
 0x1a4   :  { %715 = vst [vmem:[%s1617_s5 + $0x38] sm:$0xff] %v695_v43  ;;  %795 = vmatprep.mubr.f32.mxu1 %v695_v43  ;;  %v808_v48 = vmul.f32 %v695_v43, %v695_v43  ;;  %s1181_s5 = smov 1  }
 0x1a5   :  { %796 = vmatmul.mubr.f32.gmra.mrb[6].mxu1 %v694_v41 }
 0x1a6   :  { %1143 = vmatpush3.bf16.msra.mxu1 %v1180_v23  ;;  %878 = vmatprep.mubr.f32.mxu1 %v804_v44 }
 0x1a7   :  { %1136 = vmatprep.subr.bf16.mxu1 %v1180_v23 }
 0x1aa   :  { %1144 = vmatpush3.bf16.msra.mxu1 %v1180_v23 }
 0x1ab   :  { %1137 = vmatprep.subr.bf16.mxu1 %v1180_v23 }
 0x1ae   :  { %1145 = vmatpush3.bf16.msra.mxu1 %v1180_v23 }
 0x1af   :  { %1138 = vmatprep.subr.bf16.mxu1 %v1180_v23 }
 0x1b2   :  { %1146 = vmatpush3.bf16.msra.mxu1 %v1180_v23 }
 0x1b3   :  { %1139 = vmatprep.subr.bf16.mxu1 %v1180_v23 }
 0x1b6   :  { %1147 = vmatpush3.bf16.msra.mxu1 %v1180_v23 }
 0x1b9   :  { %879 = vmatmul.mubr.f32.vlgmr.msra.gmra.mrb[8].mxu1 %v803_v45 }
 0x1ba   :  { %883 = vmatprep.mubr.f32.mxu1 %v806_v46 }
 0x1bd   :  { %884 = vmatmul.mubr.f32.gmra.mrb[10].mxu1 %v805_v47 }
 0x1be   :  { %888 = vmatprep.mubr.f32.mxu1 %v808_v48 }
 0x1c1   :  { %889 = vmatmul.mubr.f32.gmra.mrb[12].mxu1 %v807_v31 }
 0x26c   :  { %v1012_v42 = vpop.f32.mrb[0].mxu1 }
 0x26d   :  { %v1013_v49 = vpop.f32.mrb[1].mxu1 }
 0x26e   :  { %v1014_v50 = vadd.f32 %v1013_v49, %v1012_v42  ;;  %v1056_v51 = vpop.f32.mrb[8].mxu0 }
 0x26f   :  { %v1057_v29 = vpop.f32.mrb[9].mxu0 }
 0x270   :  { %v1058_v26 = vadd.f32 %v1057_v29, %v1056_v51  ;;  %v1015_v52 = vpop.f32.mrb[2].mxu1 }
 0x271   :  { %v1016_v53 = vpop.f32.mrb[3].mxu1 }
 0x272   :  { %v1017_v54 = vadd.f32 %v1016_v53, %v1015_v52  ;;  %898 = vrot.lane.b32.xlu1 %v1058_v26, %s1181_s5 }
 0x274   :  { %v1018_v23 = vpop.f32.mrb[4].mxu1 }
 0x275   :  { %v1019_v55 = vpop.f32.mrb[5].mxu1 }
 0x276   :  { %v1020_v56 = vadd.f32 %v1019_v55, %v1018_v23 }
 0x278   :  { %v1021_v57 = vpop.f32.mrb[6].mxu1 }
 0x279   :  { %v1022_v58 = vpop.f32.mrb[7].mxu1 }
 0x27a   :  { %v1023_v59 = vadd.f32 %v1022_v58, %v1021_v57 }
 0x28c   :  { %v1059_v60 = vpop.f32.mrb[8].mxu1 }
 0x28d   :  { %v1060_v61 = vpop.f32.mrb[9].mxu1 }
 0x28e   :  { %v1061_v62 = vadd.f32 %v1060_v61, %v1059_v60 }
 0x290   :  { %v1062_v63 = vpop.f32.mrb[10].mxu1  ;;  %900 = vrot.lane.b32.xlu0 %v1061_v62, %s1181_s5 }
 0x291   :  { %v1063_v0 = vpop.f32.mrb[11].mxu1 }
 0x292   :  { %v1064_v1 = vadd.f32 %v1063_v0, %v1062_v63 }
 0x294   :  { %v1065_v2 = vpop.f32.mrb[12].mxu1  ;;  %902 = vrot.lane.b32.xlu1 %v1064_v1, %s1181_s5 }
 0x295   :  { %v1066_v3 = vpop.f32.mrb[13].mxu1 }
 0x296   :  { %v1067_v4 = vadd.f32 %v1066_v3, %v1065_v2 }
 0x298   :  { %904 = vrot.lane.b32.xlu0 %v1067_v4, %s1181_s5 }
 0x2e4   :  { %v899_v27 = vpop.permute.xlu1 %898 }
 0x2e5   :  { %v911_v25 = vsel %vm910_vm11, %v1014_v50, %v899_v27 }
 0x2e6   :  { %916 = vst.msk [vmem:[%s1618_s6] sm:$0xff] %vm915_vm12, %v911_v25 }
 0x302   :  { %v901_v28 = vpop.permute.xlu0 %900 }
 0x303   :  { %v912_v5 = vsel %vm910_vm11, %v1017_v54, %v901_v28 }
 0x304   :  { %917 = vst.msk [vmem:[%s1618_s6 + $0x8] sm:$0xff] %vm915_vm12, %v912_v5 }
 0x306   :  { %v903_v15 = vpop.permute.xlu1 %902 }
 0x307   :  { %v913_v6 = vsel %vm910_vm11, %v1020_v56, %v903_v15 }
 0x308   :  { %918 = vst.msk [vmem:[%s1618_s6 + $0x10] sm:$0xff] %vm915_vm12, %v913_v6 }
 0x30a   :  { %v905_v7 = vpop.permute.xlu0 %904 }
 0x30b   :  { %v914_v8 = vsel %vm910_vm11, %v1023_v59, %v905_v7 }
 0x30c   :  { %919 = vst.msk [vmem:[%s1618_s6 + $0x18] sm:$0xff] %vm915_vm12, %v914_v8 }

// kernel: tcn2_forward.7
= control target key start
LH: loop header
LB: loop body
LE: loop exit
PB: predicated region body
PF: predicated region fallthrough
CT: control target
= control target key end

     0   :  { %v727_v2 = vmov 0   ;;  %s1001_s0 = inlined_call_operand.vmem [shape: f32[32,2], index: 0, kind: input, shape index: {}]   ;;  %s1002_s1 = inlined_call_operand.vmem [shape: f32[3,1,32], index: 1, kind: input, shape index: {}]   ;;  %s1003_s2 = inlined_call_operand.vmem [shape: f32[32,256], index: 2, kind: input, shape index: {}, may-alias: {2,3,4}]   ;;  %s1004_s3 = inlined_call_operand.vmem [shape: f32[32,256], index: 3, kind: input, shape index: {}, may-alias: {2,3,4}]   ;;  %s1005_s4 = inlined_call_operand.vmem [shape: f32[32,256], index: 4, kind: input, shape index: {}, may-alias: {2,3,4}]   ;;  %s1006_s5 = inlined_call_operand.hbm [shape: f32[1,256], index: 5, kind: output, shape index: {}]  }
   0x1   :  { %v170_v0 = vld [vmem:[%s1001_s0 + $0x10] sm:$0xff]  ;;  %v168_v1 = vld [vmem:[%s1001_s0] sm:$0xff]  ;;  %697 = vset.pattern.permute.xlu1 %v727_v2  ;;  %696 = vset.pattern.permute.xlu0 %v727_v2  ;;  %v171_v3 = vld [vmem:[%s1001_s0 + $0x18] sm:$0xff] }
   0x2   :  { %239 = vperm.xlu1 %697, %v170_v0   ;;  %229 = vperm.xlu0 %696, %v168_v1   ;;  %v169_v4 = vld [vmem:[%s1001_s0 + $0x8] sm:$0xff] }
   0x6   :  { %244 = vperm.xlu1 %697, %v171_v3   ;;  %234 = vperm.xlu0 %696, %v169_v4  }
   0x7   :  { %10 = vsyncpa [#allocation5], 0  ;;  %v174_v5 = vld [vmem:[%s1003_s2 + $0x10] sm:$0xff]  ;;  %v172_v6 = vld [vmem:[%s1003_s2] sm:$0xff]  ;;  %s728_s30 = smov 8   ;;  %s729_s25 = smov 120   ;;  %v133_v23 = vlaneseq }
   0x8   :  { %v175_v7 = vld [vmem:[%s1003_s2 + $0x18] sm:$0xff]  ;;  %v173_v8 = vld [vmem:[%s1003_s2 + $0x8] sm:$0xff]  ;;  %v60_v9 = vld [vmem:[%s1004_s3 + $0x10] sm:$0xff]  ;;  %v730_v19 = vmov 0.0   ;;  %v731_v22 = vmov 1   ;;  %vm338_vm4 = vcmask 261120  }
   0x9   :  { %v58_v10 = vld [vmem:[%s1004_s3] sm:$0xff]  ;;  %v178_v11 = vld [vmem:[%s1003_s2 + $0x30] sm:$0xff]  ;;  %v179_v13 = vld [vmem:[%s1003_s2 + $0x38] sm:$0xff]  ;;  %480 = vmatprep.mubr.f32.mxu0 %v730_v19  ;;  %406 = vmatprep.mubr.f32.mxu1 %v730_v19  ;;  %v831_v26 = vand.u32 127, %v133_v23  ;;  %vm599_vm11 = vcmp.lt.s32.totalorder %v133_v23, 256 }
   0xa   :  { %190 = vrot.lane.b32.xlu1 %v174_v5, %s728_s30  ;;  %188 = vrot.lane.b32.xlu0 %v172_v6, %s728_s30  ;;  %v176_v12 = vld [vmem:[%s1003_s2 + $0x20] sm:$0xff]  ;;  %v177_v14 = vld [vmem:[%s1003_s2 + $0x28] sm:$0xff] }
   0xb   :  { %v64_v15 = vld [vmem:[%s1004_s3 + $0x30] sm:$0xff]  ;;  %v62_v16 = vld [vmem:[%s1004_s3 + $0x20] sm:$0xff]  ;;  %v629_v17 = vld [vmem:[%s1005_s4 + $0x18] sm:$0xff]  ;;  %698 = vset.pattern.permute.xlu0 %v731_v22  ;;  %v839_v30 = vadd.s32 128, %v831_v26  ;;  %vm204_vm0 = vcmp.lt.s32.totalorder %v831_v26, 8  ;;  %vm164_vm3 = vcmp.ge.s32.totalorder %v831_v26, 8 }
   0xc   :  { %v628_v18 = vld [vmem:[%s1005_s4 + $0x8] sm:$0xff]  ;;  %v631_v20 = vld [vmem:[%s1005_s4 + $0x38] sm:$0xff]  ;;  %v632_v52 = vld [vmem:[%s1002_s1 + $0x1] sm:$0x1]  ;;  %vm166_vm6 = vcmp.lt.s32.totalorder %v831_v26, 120  ;;  %vm300_vm7 = vcmp.ge.s32.totalorder %v831_v26, 120 }
   0xd   :  { %v630_v21 = vld [vmem:[%s1005_s4 + $0x28] sm:$0xff]  ;;  %v151_v41 = vand.u32 127, %v839_v30  ;;  %vm885_vm5 = vmpackc.low %vm164_vm3, %vm164_vm3  ;;  %v643_v26 = vld [vmem:[%s1002_s1 + $0x2] sm:$0x1] }
   0xe   :  { %198 = vrot.lane.b32.xlu1 %v175_v7, %s728_s30  ;;  %196 = vrot.lane.b32.xlu0 %v173_v8, %s728_s30  ;;  %vm949_vm10 = vmpackc.low %vm166_vm6, %vm166_vm6 }
   0xf   :  { %vm852_vm1 = vcmp.ge.s32.totalorder %v151_v41, 8  ;;  %vm931_vm8 = vcmp.lt.s32.totalorder %v151_v41, 120 }
  0x10   :  { %vm662_vm2 = vmpackc.low %vm852_vm1, %vm852_vm1 }
  0x11   :  { %vm674_vm9 = vmpackc.low %vm931_vm8, %vm931_vm8 }
  0x12   :  { %215 = vrot.lane.b32.xlu1 %v60_v9, %s728_s30  ;;  %213 = vrot.lane.b32.xlu0 %v58_v10, %s728_s30 }
  0x16   :  { %194 = vrot.lane.b32.xlu1 %v178_v11, %s728_s30  ;;  %192 = vrot.lane.b32.xlu0 %v176_v12, %s728_s30 }
  0x1a   :  { %202 = vrot.lane.b32.xlu1 %v179_v13, %s728_s30  ;;  %200 = vrot.lane.b32.xlu0 %v177_v14, %s728_s30 }
  0x1e   :  { %219 = vrot.lane.b32.xlu1 %v64_v15, %s728_s30  ;;  %217 = vrot.lane.b32.xlu0 %v62_v16, %s728_s30 }
  0x22   :  { %269 = vrot.lane.b32.xlu1 %v174_v5, %s729_s25  ;;  %267 = vrot.lane.b32.xlu0 %v172_v6, %s729_s25 }
  0x26   :  { %277 = vrot.lane.b32.xlu1 %v175_v7, %s729_s25  ;;  %275 = vrot.lane.b32.xlu0 %v173_v8, %s729_s25 }
  0x2a   :  { %294 = vrot.lane.b32.xlu1 %v629_v17, %s729_s25  ;;  %292 = vrot.lane.b32.xlu0 %v628_v18, %s729_s25 }
  0x2e   :  { %273 = vrot.lane.b32.xlu1 %v178_v11, %s729_s25  ;;  %271 = vrot.lane.b32.xlu0 %v176_v12, %s729_s25 }
  0x32   :  { %281 = vrot.lane.b32.xlu1 %v179_v13, %s729_s25  ;;  %279 = vrot.lane.b32.xlu0 %v177_v14, %s729_s25 }
  0x36   :  { %298 = vrot.lane.b32.xlu1 %v631_v20, %s729_s25  ;;  %296 = vrot.lane.b32.xlu0 %v630_v21, %s729_s25  ;;  %v327_v21 = vld [vmem:[%s1002_s1] sm:$0x1]  ;;  %s733_s1 = smov [#allocation4]  }
  0x37   :  { %s608_s11 = sshll.u32 %s733_s1, 4  ;;  %s609_s11 = int_to_ptr.vmem [resolvable:$true] %s608_s11 }
  0x38   :  { %s703_s12 = scalar_lea.vmem %s609_s11, 32  ;;  %p708_p1 = scmp.lt.s32.totalorder %s609_s11, %s609_s11 }
  0x39   :  { %p704_p0 = scmp.ne.s32.totalorder %s609_s11, %s703_s12  ;;  %p709_p2 = scmp.lt.s32.totalorder %s703_s12, %s703_s12 }
  0x3a   :  { %566 = vperm.xlu0 %698, %v168_v1  }
  0x3b   :  { %p710_p3 = por %p709_p2, %p708_p1 }
  0x3d   :  { %p711_p4 = pnand %p710_p3, %p704_p0 }
  0x81   :  { %v826_v24 = vpop.permute.xlu1 %239  ;;  %v828_v25 = vpop.permute.xlu0 %229 }
  0x82   :  { %v331_v29 = vadd.f32 %v828_v25, %v173_v8  ;;  %v330_v32 = vadd.f32 %v828_v25, %v172_v6  ;;  %v335_v37 = vadd.f32 %v826_v24, %v177_v14  ;;  %v334_v43 = vadd.f32 %v826_v24, %v176_v12 }
  0x85   :  { %v833_v27 = vpop.permute.xlu1 %244  ;;  %v835_v28 = vpop.permute.xlu0 %234 }
  0x86   :  { %v333_v31 = vadd.f32 %v835_v28, %v175_v7  ;;  %v332_v33 = vadd.f32 %v835_v28, %v174_v5  ;;  %v337_v34 = vadd.f32 %v833_v27, %v179_v13  ;;  %v336_v40 = vadd.f32 %v833_v27, %v178_v11 }
  0x88   :  { %v653_v35 = vpack.c.bf16 %v333_v31, %v331_v29  ;;  %v655_v36 = vpack.c.bf16 %v332_v33, %v330_v32  ;;  %v657_v42 = vpack.c.bf16 %v337_v34, %v335_v37  ;;  %v659_v46 = vpack.c.bf16 %v336_v40, %v334_v43 }
  0x89   :  { %v191_v38 = vpop.permute.xlu1 %190  ;;  %v189_v39 = vpop.permute.xlu0 %188 }
  0x8a   :  { %654 = vmatprep.subr.bf16.mxu1 %v653_v35 }
  0x8b   :  { %656 = vmatpush1.bf16.msra.mxu1 %v655_v36 }
  0x8c   :  { %658 = vmatprep.subr.bf16.mxu1 %v657_v42 }
  0x8d   :  { %v199_v44 = vpop.permute.xlu1 %198  ;;  %v197_v45 = vpop.permute.xlu0 %196 }
  0x8e   :  { %v206_v48 = vsel %vm204_vm0, %v191_v38, %v199_v44  ;;  %v205_v49 = vsel %vm204_vm0, %v189_v39, %v197_v45  ;;  %v210_v53 = vsel %vm204_vm0, %v199_v44, %v191_v38  ;;  %v209_v54 = vsel %vm204_vm0, %v197_v45, %v189_v39 }
  0x8f   :  { %v250_v50 = vadd.f32 %v835_v28, %v206_v48  ;;  %v248_v51 = vadd.f32 %v828_v25, %v205_v49  ;;  %660 = vmatpush1.bf16.msra.mxu1 %v659_v46 }
  0x91   :  { %v216_v55 = vpop.permute.xlu1 %215  ;;  %v214_v56 = vpop.permute.xlu0 %213  ;;  %v661_v57 = vpack.c.bf16 %v250_v50, %v248_v51 }
  0x92   :  { %v224_v58 = vsel %vm204_vm0, %v216_v55, %v210_v53  ;;  %v223_v59 = vsel %vm204_vm0, %v214_v56, %v209_v54  ;;  %633 = vmatmul.mubr.msk.f32.vlgmr.msra.gmra.mrb[0].mxu1 %vm338_vm4, %v632_v52 }
  0x93   :  { %v249_v60 = vadd.f32 %v835_v28, %v224_v58  ;;  %v247_v61 = vadd.f32 %v828_v25, %v223_v59  ;;  %663 = vmatprep.subr.msk.bf16.mxu0 %vm662_vm2, %v661_v57 }
  0x95   :  { %v195_v63 = vpop.permute.xlu1 %194  ;;  %v193_v0 = vpop.permute.xlu0 %192  ;;  %v664_v1 = vpack.c.bf16 %v249_v60, %v247_v61 }
  0x97   :  { %666 = vmatpush1.bf16.msk.msra.mxu0 %vm885_vm5, %v664_v1 }
  0x99   :  { %v203_v2 = vpop.permute.xlu1 %202  ;;  %v201_v3 = vpop.permute.xlu0 %200 }
  0x9a   :  { %v208_v4 = vsel %vm204_vm0, %v195_v63, %v203_v2  ;;  %v207_v5 = vsel %vm204_vm0, %v193_v0, %v201_v3  ;;  %v212_v8 = vsel %vm204_vm0, %v203_v2, %v195_v63  ;;  %v211_v9 = vsel %vm204_vm0, %v201_v3, %v193_v0 }
  0x9b   :  { %v254_v6 = vadd.f32 %v833_v27, %v208_v4  ;;  %v252_v7 = vadd.f32 %v826_v24, %v207_v5 }
  0x9d   :  { %v667_v10 = vpack.c.bf16 %v254_v6, %v252_v7  ;;  %v220_v11 = vpop.permute.xlu1 %219  ;;  %v218_v12 = vpop.permute.xlu0 %217  ;;  %v732_v6 = vmov 1966171168  }
  0x9e   :  { %v226_v13 = vsel %vm204_vm0, %v220_v11, %v212_v8  ;;  %v225_v14 = vsel %vm204_vm0, %v218_v12, %v211_v9  ;;  %v583_v7 = vunpack.c.l.s4 %v732_v6 }
  0x9f   :  { %v253_v15 = vadd.f32 %v833_v27, %v226_v13  ;;  %v251_v16 = vadd.f32 %v826_v24, %v225_v14  ;;  %669 = vmatprep.subr.msk.bf16.mxu0 %vm662_vm2, %v667_v10  ;;  %v586_v10 = vshrl.u32 %v133_v23, 7 }
  0xa0   :  { %v584_v9 = vunpack.c.0.s8 %v583_v7 }
  0xa1   :  { %v670_v17 = vpack.c.bf16 %v253_v15, %v251_v16  ;;  %v270_v18 = vpop.permute.xlu1 %269  ;;  %v268_v20 = vpop.permute.xlu0 %267 }
  0xa2   :  { %v587_v16 = vsub.s32 %v584_v9, %v586_v10 }
  0xa3   :  { %672 = vmatpush1.bf16.msk.msra.mxu0 %vm885_vm5, %v670_v17 }
  0xa5   :  { %v278_v22 = vpop.permute.xlu1 %277  ;;  %v276_v29 = vpop.permute.xlu0 %275 }
  0xa6   :  { %642 = vmatmul.mubr.msk.f32.vlgmr.msra.gmra.mrb[0].mxu0 %vm338_vm4, %v327_v21  ;;  %v285_v31 = vsel %vm166_vm6, %v270_v18, %v278_v22  ;;  %v284_v32 = vsel %vm166_vm6, %v268_v20, %v276_v29  ;;  %v289_v33 = vsel %vm166_vm6, %v278_v22, %v270_v18  ;;  %v288_v34 = vsel %vm166_vm6, %v276_v29, %v268_v20 }
  0xa7   :  { %556 = vmatprep.mubr.f32.mxu0 %v730_v19  ;;  %v309_v38 = vadd.f32 %v285_v31, %v835_v28  ;;  %v307_v39 = vadd.f32 %v284_v32, %v828_v25 }
  0xa9   :  { %v295_v35 = vpop.permute.xlu1 %294  ;;  %v293_v36 = vpop.permute.xlu0 %292  ;;  %v676_v46 = vpack.c.bf16 %v309_v38, %v307_v39 }
  0xaa   :  { %v304_v19 = vsel %vm300_vm7, %v295_v35, %v289_v33  ;;  %v303_v40 = vsel %vm300_vm7, %v293_v36, %v288_v34 }
  0xab   :  { %v310_v42 = vadd.f32 %v304_v19, %v835_v28  ;;  %v308_v43 = vadd.f32 %v303_v40, %v828_v25 }
  0xad   :  { %v673_v30 = vpack.c.bf16 %v310_v42, %v308_v43  ;;  %v274_v41 = vpop.permute.xlu1 %273  ;;  %v272_v44 = vpop.permute.xlu0 %271 }
  0xaf   :  { %675 = vmatprep.subr.msk.bf16.mxu0 %vm674_vm9, %v673_v30 }
  0xb0   :  { %678 = vmatpush1.bf16.msk.msra.mxu0 %vm949_vm10, %v676_v46 }
  0xb1   :  { %v282_v25 = vpop.permute.xlu1 %281  ;;  %v280_v28 = vpop.permute.xlu0 %279 }
  0xb2   :  { %v287_v47 = vsel %vm166_vm6, %v274_v41, %v282_v25  ;;  %v286_v48 = vsel %vm166_vm6, %v272_v44, %v280_v28  ;;  %v291_v49 = vsel %vm166_vm6, %v282_v25, %v274_v41  ;;  %v290_v50 = vsel %vm166_vm6, %v280_v28, %v272_v44 }
  0xb3   :  { %v313_v53 = vadd.f32 %v287_v47, %v833_v27  ;;  %v311_v54 = vadd.f32 %v286_v48, %v826_v24 }
  0xb5   :  { %v299_v51 = vpop.permute.xlu1 %298  ;;  %v297_v52 = vpop.permute.xlu0 %296  ;;  %v682_v60 = vpack.c.bf16 %v313_v53, %v311_v54 }
  0xb6   :  { %v306_v55 = vsel %vm300_vm7, %v299_v51, %v291_v49  ;;  %v305_v56 = vsel %vm300_vm7, %v297_v52, %v290_v50 }
  0xb7   :  { %v314_v57 = vadd.f32 %v306_v55, %v833_v27  ;;  %v312_v58 = vadd.f32 %v305_v56, %v826_v24 }
  0xb9   :  { %v679_v59 = vpack.c.bf16 %v314_v57, %v312_v58  ;;  %v567_v62 = vpop.permute.xlu0 %566 }
  0xbb   :  { %681 = vmatprep.subr.msk.bf16.mxu0 %vm674_vm9, %v679_v59 }
  0xbc   :  { %684 = vmatpush1.bf16.msk.msra.mxu0 %vm949_vm10, %v682_v60 }
  0xbf   :  { %652 = vmatmul.mubr.msk.f32.vlgmr.msra.gmra.mrb[0].mxu0 %vm338_vm4, %v643_v26 }
 0x165   :  { %v408_v27 = vpop.f32.mrb[0].mxu1 }
 0x166   :  { %v410_v61 = vpop.f32.mrb[1].mxu1 }
 0x192   :  { %v558_v24 = vpop.f32.mrb[0].mxu0 }
 0x193   :  { %v685_v63 = vadd.f32 %v558_v24, %v408_v27  ;;  %v560_v0 = vpop.f32.mrb[1].mxu0 }
 0x194   :  { %v686_v1 = vadd.f32 %v560_v0, %v410_v61 }
 0x195   :  { %v569_v2 = vadd.f32 %v685_v63, %v567_v62 }
 0x196   :  { %v570_v3 = vadd.f32 %v686_v1, %v567_v62 }
 0x197   :  { %v571_v4 = vmul.f32 0.5, %v569_v2 }
 0x198   :  { %v572_v5 = vmul.f32 0.5, %v570_v3 }
 0x199   :  { %699 = vtanh.f32 %v571_v4 }
 0x19a   :  { %701 = vtanh.f32 %v572_v5 }
 0x1a3   :  { %v700_v8 = vpop.eup %699 }
 0x1a4   :  { %v702_v11 = vpop.eup %701  ;;  %v575_v12 = vmul.f32 0.5, %v700_v8 }
 0x1a5   :  { %v576_v13 = vmul.f32 0.5, %v702_v11 }
 0x1a6   :  { %v577_v14 = vadd.f32 0.5, %v575_v12 }
 0x1a7   :  { %v578_v15 = vadd.f32 0.5, %v576_v13 }
 0x1a9   :  { %v581_v17 = vcombine.low %v577_v14, %v578_v15 }
 0x1ab   :  { %v588_v18 = vrot.slane %v581_v17, %v587_v16 }
 0x1ad   :  { %v595_v20 = vrot.slane %v588_v18, %v587_v16 }
 0x1af   :  { %601 = vst.msk [vmem:[#allocation4] sm:$0x3] %vm599_vm11, %v595_v20 }
 0x1b0   :  { %714 = shalt.err (!%p711_p4)
}
 0x1b1   :  { %s715_s15 = scalar_lea.hbm %s1006_s5, 32 }
 0x1b2   :  { %p716_p5 = scmp.ne.s32.totalorder %s1006_s5, %s715_s15  ;;  %p719_p6 = scmp.lt.u32.totalorder %s715_s15, %s1006_s5 }
 0x1b4   :  { %p721_p7 = pnand %p719_p6, %p716_p5 }
 0x1b6   :  { %724 = shalt.err (!%p721_p7)
}
 0x1b7   :  { %611 = dma.vmem_to_hbm [thread:$0]  %s609_s11, 32, %s1006_s5, [#allocation5]  }
 0x1b8   :  { %725 = dma.done.wait [#allocation5], 32  }
 0x1b9   :  { %726 = vsyncadd [#allocation5], 4294967264 }
 0x1ba   :  { %615 = vsyncpa [#allocation5], 1 }

</bundles_post_ra>
